<compile_context>
chip_gen: v7x
topology: tpu7x:2x2x1
jax: 0.10.0
libtpu: 0.0.40
codegen_flags: <defaults>
</compile_context>

<pallas_src>
import jax
import jax.numpy as jnp
import numpy as np
from jax.experimental import pallas as pl
from jax.experimental.pallas import tpu as pltpu

BN_EPS = 1e-5


def _round_up(x, m):
    return ((x + m - 1) // m) * m


def _make_folding_kernel(n_hidden, grid_ch, code_ch, out_channels, row_offsets):
    """Fused kernel: split first conv, hidden conv+BN+ReLU blocks, final conv.

    All per-layer shapes / slab offsets are baked in -> every slice is static.
    Affine slab columns: [scale_0, shift_0, ..., scale_{h-1}, shift_{h-1},
                          final_bias, Wg[:, 0], ..., Wg[:, grid_ch-1]].
    """
    oc0 = out_channels[0]
    ocf = out_channels[-1]
    bias_col = 2 * n_hidden
    wg_col = 2 * n_hidden + 1

    def kernel(grids_ref, code_ref, w_ref, aff_ref, out_ref):
        aff = aff_ref[...]                            # (rows_aff, n_aff) f32
        g = grids_ref[0].astype(jnp.float32)          # (cg, tn)  VPU operand
        c = code_ref[0].astype(jnp.bfloat16)          # (cc, tn)  MXU operand

        # First conv, weight split over the concatenated channel axis.
        # Codeword part on the MXU; the tiny K=grid_ch grids part is done as
        # broadcast FMAs on the VPU (co-issues with the MXU pass).
        wc = w_ref[row_offsets[0]:row_offsets[0] + oc0, :code_ch]   # bf16
        x = jnp.dot(wc, c, preferred_element_type=jnp.float32)
        for k in range(grid_ch):
            x = x + aff[:oc0, wg_col + k:wg_col + k + 1] * g[k:k + 1, :]

        if n_hidden >= 1:
            # Hidden block 0 epilogue: fused eval-BN scale/shift + ReLU (f32).
            x = jnp.maximum(x * aff[:oc0, 0:1] + aff[:oc0, 1:2], 0.0)
            ic = oc0

            # Remaining hidden blocks.
            for layer in range(1, n_hidden):
                oc = out_channels[layer]
                r = row_offsets[layer]
                w = w_ref[r:r + oc, :ic]              # bf16 slab slice
                x = jnp.dot(w, x.astype(jnp.bfloat16),
                            preferred_element_type=jnp.float32)
                col = 2 * layer
                x = jnp.maximum(x * aff[:oc, col:col + 1]
                                + aff[:oc, col + 1:col + 2], 0.0)
                ic = oc

            # Final projection (weight + bias).
            r = row_offsets[n_hidden]
            wf = w_ref[r:r + ocf, :ic]
            x = jnp.dot(wf, x.astype(jnp.bfloat16),
                        preferred_element_type=jnp.float32)
            x = x + aff[:ocf, bias_col:bias_col + 1]
        else:
            # Degenerate case: single output conv, no BN/ReLU.
            x = x + aff[:ocf, bias_col:bias_col + 1]

        out_ref[0] = x.astype(out_ref.dtype)

    return kernel


def init_folding_params(key, grid_ch, code_ch, out_channels):
    """Deterministic synthetic parameters mirroring FoldingLayer.__init__,
    pre-packed (eval-mode BN folded) for the fused kernel."""
    in_channel = grid_ch + code_ch
    n_hidden = len(out_channels) - 1
    raw_layers = []  # (W, b, gamma, beta, mean, var) per hidden layer
    ic = in_channel
    keys = jax.random.split(key, 4 * len(out_channels))
    k = 0
    for oc in out_channels[:-1]:
        w = jax.random.normal(keys[k], (oc, ic), jnp.float32) * 0.1
        b = jax.random.normal(keys[k + 1], (oc,), jnp.float32) * 0.05
        gamma = jax.random.uniform(keys[k + 2], (oc,), jnp.float32, 0.5, 1.5)
        beta = jax.random.normal(keys[k + 3], (oc,), jnp.float32) * 0.05
        mean = jnp.zeros((oc,), jnp.float32)   # running stats of a fresh BN
        var = jnp.ones((oc,), jnp.float32)
        raw_layers.append((w, b, gamma, beta, mean, var))
        ic = oc
        k += 4
    ocf = out_channels[-1]
    wf = jax.random.normal(keys[k], (ocf, ic), jnp.float32) * 0.1
    bf = jax.random.normal(keys[k + 1], (ocf,), jnp.float32) * 0.05
    final = (wf, bf)

    # ---- single bf16 MXU weight slab (row-stacked, 16-row aligned) ---------
    if n_hidden >= 1:
        w0 = raw_layers[0][0]
        wg = w0[:, :grid_ch]                  # tiny grids part -> f32 / VPU
        mxu_weights = ([w0[:, grid_ch:]]
                       + [w for (w, *_r) in raw_layers[1:]] + [wf])
    else:
        wg = wf[:, :grid_ch]
        mxu_weights = [wf[:, grid_ch:]]
    row_offsets, off = [], 0
    for w in mxu_weights:
        row_offsets.append(off)
        off += _round_up(w.shape[0], 16)      # bf16 packs 16 sublanes / vreg
    slab_rows = _round_up(max(off, 16), 16)
    slab_cols = _round_up(max(w.shape[1] for w in mxu_weights), 128)
    wslab = np.zeros((slab_rows, slab_cols), np.float32)
    for w, r in zip(mxu_weights, row_offsets):
        wslab[r:r + w.shape[0], :w.shape[1]] = np.asarray(w)
    wslab = jnp.asarray(wslab, dtype=jnp.bfloat16)

    # ---- single f32 affine slab: BN scale/shift, final bias, Wg ------------
    max_oc = max(out_channels)
    aff_rows = _round_up(max(max_oc, 8), 8)
    n_aff = 2 * n_hidden + 1 + grid_ch
    affine = np.zeros((aff_rows, n_aff), np.float32)
    for layer, (w, b, gamma, beta, mean, var) in enumerate(raw_layers):
        oc = out_channels[layer]
        scale = np.asarray(gamma) / np.sqrt(np.asarray(var) + BN_EPS)
        shift = (np.asarray(b) - np.asarray(mean)) * scale + np.asarray(beta)
        affine[:oc, 2 * layer] = scale
        affine[:oc, 2 * layer + 1] = shift
    affine[:ocf, 2 * n_hidden] = np.asarray(bf)
    affine[:out_channels[0], 2 * n_hidden + 1:] = np.asarray(wg)
    affine = jnp.asarray(affine)

    return dict(n_hidden=n_hidden, grid_ch=grid_ch, code_ch=code_ch,
                out_channels=tuple(out_channels),
                wslab=wslab, affine=affine, row_offsets=tuple(row_offsets),
                raw_layers=raw_layers, final=final)


def folding_layer_apply(grids, codewords, params, *, tile_n=None):
    """Fused FoldingLayer forward via a single Pallas TPU kernel."""
    B, cg, N = grids.shape
    Bc, cc, Nc = codewords.shape
    assert (B, N) == (Bc, Nc)
    assert cg == params["grid_ch"]
    assert cc == params["code_ch"]

    out_channels = params["out_channels"]
    c_out = out_channels[-1]
    wslab = params["wslab"]
    affine = params["affine"]
    max_oc = max(out_channels)

    # Tile choice: one fat lane-aligned tile per batch covers the whole point
    # axis (fewer grid steps on an overhead-bound kernel).  When B == 1, split
    # N into >=2 parallel tiles so v7x's second TensorCore is used.  Cap the
    # per-step working set (inputs/outputs double-buffered + f32 activations)
    # at ~12 MiB so it fits the smallest default scoped-VMEM budget (v5e)
    # without any vmem_limit override.
    n_lane = 128 * pl.cdiv(N, 128)
    bytes_per_col = (2 * (cg * 4 + cc * codewords.dtype.itemsize + c_out * 4)
                     + 3 * max_oc * 4)
    vmem_budget = 12 * 1024 * 1024
    cap = max(128, (vmem_budget // bytes_per_col // 128) * 128)
    if tile_n is None:
        tile_n = n_lane if B >= 2 else max(128, (n_lane // 2 // 128) * 128)
    tile_n = max(128, (min(tile_n, n_lane, cap) // 128) * 128)
    num_tiles = pl.cdiv(N, tile_n)

    kernel = _make_folding_kernel(params["n_hidden"], cg, cc, out_channels,
                                  params["row_offsets"])

    # NOTE: no jnp.pad of the inputs and no output slice — Pallas handles the
    # ragged tail block (OOB input lanes are per-column garbage that only
    # feeds OOB output lanes, which are masked on store).
    return pl.pallas_call(
        kernel,
        out_shape=jax.ShapeDtypeStruct((B, c_out, N), jnp.float32),
        grid_spec=pltpu.PrefetchScalarGridSpec(
            num_scalar_prefetch=0,
            grid=(B, num_tiles),                       # both axes independent
            in_specs=[
                pl.BlockSpec((1, cg, tile_n), lambda b, j: (b, 0, j)),
                pl.BlockSpec((1, cc, tile_n), lambda b, j: (b, 0, j)),
                pl.BlockSpec(wslab.shape, lambda b, j: (0, 0)),    # resident
                pl.BlockSpec(affine.shape, lambda b, j: (0, 0)),   # resident
            ],
            out_specs=pl.BlockSpec((1, c_out, tile_n), lambda b, j: (b, 0, j)),
        ),
        compiler_params=pltpu.CompilerParams(
            dimension_semantics=("parallel", "parallel")),
    )(grids, codewords, wslab, affine)


def folding_layer_reference(grids, codewords, params):
    """Pure-JAX f32 reference mirroring the PyTorch forward (eval-mode BN)."""
    x = jnp.concatenate([grids.astype(jnp.float32),
                         codewords.astype(jnp.float32)], axis=1)  # (B, C, N)
    for (w, b, gamma, beta, mean, var) in params["raw_layers"]:
        x = jnp.einsum("oc,bcn->bon", w, x) + b[None, :, None]
        x = ((x - mean[None, :, None]) / jnp.sqrt(var[None, :, None] + BN_EPS)
             * gamma[None, :, None] + beta[None, :, None])
        x = jnp.maximum(x, 0.0)
    wf, bf = params["final"]
    x = jnp.einsum("oc,bcn->bon", wf, x) + bf[None, :, None]
    return x


if __name__ == "__main__":
    # Small FoldingNet-style config: grids (B, 2, N), codewords (B, 32, N),
    # FoldingLayer(in_channel=2+32, out_channels=[32, 32, 3]).  N = 45*45 is
    # the real FoldingNet point count and exercises the ragged-tail path
    # (2025 columns in a 2048-wide tile, masked on store).
    B, CG, CC, N = 2, 2, 32, 45 * 45
    OUT_CHANNELS = [32, 32, 3]

    key = jax.random.PRNGKey(0)
    k_g, k_c, k_p = jax.random.split(key, 3)
    grids = jax.random.normal(k_g, (B, CG, N), jnp.float32)
    # Producer emits bf16 codewords: halves HBM traffic of the dominant input.
    codewords = jax.random.normal(k_c, (B, CC, N), jnp.float32).astype(jnp.bfloat16)
    params = init_folding_params(k_p, CG, CC, OUT_CHANNELS)

    out = jax.block_until_ready(folding_layer_apply(grids, codewords, params))
    ref = jax.block_until_ready(folding_layer_reference(grids, codewords, params))

    # Tolerance accounts for bf16 MXU operands (weights + hidden activations)
    # vs. the pure-f32 reference; accumulation is f32 in both.
    np.testing.assert_allclose(np.asarray(out), np.asarray(ref),
                               rtol=2e-2, atol=2e-2)
    assert out.shape == (B, OUT_CHANNELS[-1], N)
    print("KERNEL_OK")
</pallas_src>

<mosaic_0001>
module attributes {stable_mosaic.version = 11 : i64} {
  func.func @kernel(%arg0: i32, %arg1: i32, %arg2: memref<1x2x2048xf32, #tpu.memory_space<vmem>>, %arg3: memref<1x32x2048xbf16, #tpu.memory_space<vmem>>, %arg4: memref<80x128xbf16, #tpu.memory_space<vmem>>, %arg5: memref<32x7xf32, #tpu.memory_space<vmem>>, %arg6: memref<1x3x2048xf32, #tpu.memory_space<vmem>>) attributes {dimension_semantics = [#tpu.dimension_semantics<parallel>, #tpu.dimension_semantics<parallel>], iteration_bounds = array<i64: 2, 1>, scalar_prefetch = 0 : i64, scratch_operands = 0 : i64, tpu.core_type = #tpu.core_type<tc>, window_params = [{transform_indices = @transform_0, window_bounds = array<i64: 1, 2, 2048>}, {transform_indices = @transform_1, window_bounds = array<i64: 1, 32, 2048>}, {pipeline_mode = #tpu.pipeline_mode<synchronous>, transform_indices = @transform_2, window_bounds = array<i64: 80, 128>}, {pipeline_mode = #tpu.pipeline_mode<synchronous>, transform_indices = @transform_3, window_bounds = array<i64: 32, 7>}, {transform_indices = @transform_4, window_bounds = array<i64: 1, 3, 2048>}]} {
    %c0 = arith.constant 0 : index
    %c0_0 = arith.constant 0 : index
    %0 = vector.load %arg5[%c0, %c0_0] : memref<32x7xf32, #tpu.memory_space<vmem>>, vector<32x7xf32>
    %c0_1 = arith.constant 0 : index
    %c0_2 = arith.constant 0 : index
    %c0_3 = arith.constant 0 : index
    %1 = vector.load %arg2[%c0_1, %c0_2, %c0_3] : memref<1x2x2048xf32, #tpu.memory_space<vmem>>, vector<1x2x2048xf32>
    %2 = vector.shape_cast %1 : vector<1x2x2048xf32> to vector<2x2048xf32>
    %c0_4 = arith.constant 0 : index
    %c0_5 = arith.constant 0 : index
    %c0_6 = arith.constant 0 : index
    %3 = vector.load %arg3[%c0_4, %c0_5, %c0_6] : memref<1x32x2048xbf16, #tpu.memory_space<vmem>>, vector<1x32x2048xbf16>
    %4 = vector.shape_cast %3 : vector<1x32x2048xbf16> to vector<32x2048xbf16>
    %c0_7 = arith.constant 0 : index
    %c0_8 = arith.constant 0 : index
    %5 = vector.load %arg4[%c0_7, %c0_8] : memref<80x128xbf16, #tpu.memory_space<vmem>>, vector<32x32xbf16>
    %cst = arith.constant dense<0.000000e+00> : vector<32x2048xf32>
    %6 = tpu.matmul %5, %4, %cst {dimension_numbers = #tpu.dot_dimension_numbers<[1], [0], [0], [1], [0, 0, 1, 1], [], []>} : vector<32x32xbf16>, vector<32x2048xbf16>, vector<32x2048xf32> -> vector<32x2048xf32>
    %7 = vector.extract_strided_slice %0 {offsets = [0, 5], sizes = [32, 1], strides = [1, 1]} : vector<32x7xf32> to vector<32x1xf32>
    %8 = vector.extract_strided_slice %2 {offsets = [0, 0], sizes = [1, 2048], strides = [1, 1]} : vector<2x2048xf32> to vector<1x2048xf32>
    %9 = vector.broadcast %7 : vector<32x1xf32> to vector<32x2048xf32>
    %10 = vector.broadcast %8 : vector<1x2048xf32> to vector<32x2048xf32>
    %11 = arith.mulf %9, %10 : vector<32x2048xf32>
    %12 = arith.addf %6, %11 : vector<32x2048xf32>
    %13 = vector.extract_strided_slice %0 {offsets = [0, 6], sizes = [32, 1], strides = [1, 1]} : vector<32x7xf32> to vector<32x1xf32>
    %14 = vector.extract_strided_slice %2 {offsets = [1, 0], sizes = [1, 2048], strides = [1, 1]} : vector<2x2048xf32> to vector<1x2048xf32>
    %15 = vector.broadcast %13 : vector<32x1xf32> to vector<32x2048xf32>
    %16 = vector.broadcast %14 : vector<1x2048xf32> to vector<32x2048xf32>
    %17 = arith.mulf %15, %16 : vector<32x2048xf32>
    %18 = arith.addf %12, %17 : vector<32x2048xf32>
    %19 = vector.extract_strided_slice %0 {offsets = [0, 0], sizes = [32, 1], strides = [1, 1]} : vector<32x7xf32> to vector<32x1xf32>
    %20 = vector.broadcast %19 : vector<32x1xf32> to vector<32x2048xf32>
    %21 = arith.mulf %18, %20 : vector<32x2048xf32>
    %22 = vector.extract_strided_slice %0 {offsets = [0, 1], sizes = [32, 1], strides = [1, 1]} : vector<32x7xf32> to vector<32x1xf32>
    %23 = vector.broadcast %22 : vector<32x1xf32> to vector<32x2048xf32>
    %24 = arith.addf %21, %23 : vector<32x2048xf32>
    %cst_9 = arith.constant 0.000000e+00 : f32
    %25 = vector.broadcast %cst_9 : f32 to vector<32x2048xf32>
    %26 = arith.maximumf %24, %25 : vector<32x2048xf32>
    %c32 = arith.constant 32 : index
    %c0_10 = arith.constant 0 : index
    %27 = vector.load %arg4[%c32, %c0_10] : memref<80x128xbf16, #tpu.memory_space<vmem>>, vector<32x32xbf16>
    %28 = arith.truncf %26 : vector<32x2048xf32> to vector<32x2048xbf16>
    %cst_11 = arith.constant dense<0.000000e+00> : vector<32x2048xf32>
    %29 = tpu.matmul %27, %28, %cst_11 {dimension_numbers = #tpu.dot_dimension_numbers<[1], [0], [0], [1], [0, 0, 1, 1], [], []>} : vector<32x32xbf16>, vector<32x2048xbf16>, vector<32x2048xf32> -> vector<32x2048xf32>
    %30 = vector.extract_strided_slice %0 {offsets = [0, 2], sizes = [32, 1], strides = [1, 1]} : vector<32x7xf32> to vector<32x1xf32>
    %31 = vector.broadcast %30 : vector<32x1xf32> to vector<32x2048xf32>
    %32 = arith.mulf %29, %31 : vector<32x2048xf32>
    %33 = vector.extract_strided_slice %0 {offsets = [0, 3], sizes = [32, 1], strides = [1, 1]} : vector<32x7xf32> to vector<32x1xf32>
    %34 = vector.broadcast %33 : vector<32x1xf32> to vector<32x2048xf32>
    %35 = arith.addf %32, %34 : vector<32x2048xf32>
    %cst_12 = arith.constant 0.000000e+00 : f32
    %36 = vector.broadcast %cst_12 : f32 to vector<32x2048xf32>
    %37 = arith.maximumf %35, %36 : vector<32x2048xf32>
    %c64 = arith.constant 64 : index
    %c0_13 = arith.constant 0 : index
    %38 = vector.load %arg4[%c64, %c0_13] : memref<80x128xbf16, #tpu.memory_space<vmem>>, vector<3x32xbf16>
    %39 = arith.truncf %37 : vector<32x2048xf32> to vector<32x2048xbf16>
    %cst_14 = arith.constant dense<0.000000e+00> : vector<3x2048xf32>
    %40 = tpu.matmul %38, %39, %cst_14 {dimension_numbers = #tpu.dot_dimension_numbers<[1], [0], [0], [1], [0, 0, 1, 1], [], []>} : vector<3x32xbf16>, vector<32x2048xbf16>, vector<3x2048xf32> -> vector<3x2048xf32>
    %41 = vector.extract_strided_slice %0 {offsets = [0, 4], sizes = [3, 1], strides = [1, 1]} : vector<32x7xf32> to vector<3x1xf32>
    %42 = vector.broadcast %41 : vector<3x1xf32> to vector<3x2048xf32>
    %43 = arith.addf %40, %42 : vector<3x2048xf32>
    %c0_15 = arith.constant 0 : index
    %c0_16 = arith.constant 0 : index
    %c0_17 = arith.constant 0 : index
    %44 = vector.load %arg6[%c0_15, %c0_16, %c0_17] : memref<1x3x2048xf32, #tpu.memory_space<vmem>>, vector<1x3x2048xf32>
    %45 = vector.shape_cast %44 : vector<1x3x2048xf32> to vector<3x2048xf32>
    %46 = vector.shape_cast %43 : vector<3x2048xf32> to vector<1x3x2048xf32>
    tpu.vector_store %arg6[%c0_15, %c0_16, %c0_17], %46 {strides = array<i32>} : memref<1x3x2048xf32, #tpu.memory_space<vmem>>, vector<1x3x2048xf32>,
    return
  }
  func.func @transform_0(%arg0: i32, %arg1: i32) -> (i32, i32, i32) {
    %c0_i32 = arith.constant 0 : i32
    %c0_i32_0 = arith.constant 0 : i32
    return %arg0, %c0_i32, %arg1 : i32, i32, i32
  }
  func.func @transform_1(%arg0: i32, %arg1: i32) -> (i32, i32, i32) {
    %c0_i32 = arith.constant 0 : i32
    %c0_i32_0 = arith.constant 0 : i32
    return %arg0, %c0_i32, %arg1 : i32, i32, i32
  }
  func.func @transform_2(%arg0: i32, %arg1: i32) -> (i32, i32) {
    %c0_i32 = arith.constant 0 : i32
    %c0_i32_0 = arith.constant 0 : i32
    %c0_i32_1 = arith.constant 0 : i32
    return %c0_i32, %c0_i32_0 : i32, i32
  }
  func.func @transform_3(%arg0: i32, %arg1: i32) -> (i32, i32) {
    %c0_i32 = arith.constant 0 : i32
    %c0_i32_0 = arith.constant 0 : i32
    %c0_i32_1 = arith.constant 0 : i32
    return %c0_i32, %c0_i32_0 : i32, i32
  }
  func.func @transform_4(%arg0: i32, %arg1: i32) -> (i32, i32, i32) {
    %c0_i32 = arith.constant 0 : i32
    %c0_i32_0 = arith.constant 0 : i32
    return %arg0, %c0_i32, %arg1 : i32, i32, i32
  }
}

</mosaic_0001>

<bundles_post_ra>
// kernel: tpu_custom_call.1
= control target key start
LH: loop header
LB: loop body
LE: loop exit
PB: predicated region body
PF: predicated region fallthrough
CT: control target
= control target key end

     0   :  { %9 = vsyncpa [#allocation3], 0  ;;  %s4949_s0 = inlined_call_operand.hbm [shape: f32[2,2,2025], index: 0, kind: input, shape index: {}]   ;;  %s4950_s1 = inlined_call_operand.hbm [shape: bf16[2,32,2025], index: 1, kind: input, shape index: {}]   ;;  %s4951_s2 = inlined_call_operand.vmem [shape: bf16[80,128], index: 2, kind: input, shape index: {}]   ;;  %s4952_s3 = inlined_call_operand.vmem [shape: f32[32,7], index: 3, kind: input, shape index: {}]   ;;  %s4953_s4 = inlined_call_operand.vmem [shape: f32[2,3,2025], index: 4, kind: output, shape index: {}]  }
   0x1   :  { %11 = vsyncpa [#allocation3 + $0x1], 0 }
   0x2   :  { %12 = vsyncpa [#allocation5], 0 }
   0x3   :  { %14 = vsyncpa [#allocation5 + $0x1], 0  ;;  %s3249_s15 = smov 0   ;;  %s3251_s16 = smov 0  }
   0x4   :  { %s3253_s17 = smov 0   ;;  %s3255_s18 = smov 0  }
   0x5   :  { %s3257_s19 = smov 0   ;;  %s3259_s20 = smov 0  }
   0x6 LB: > { %s2908_s21 = sadd.s32 4294967295, %s3211_s20   ;;  %s32_s22 = sadd.s32 1, %s3207_s19  ;;  %s3211_s20 = sphi %s3259_s20, %s20_s20   ;;  %s3207_s19 = sphi %s3257_s19, %s5138_s19   ;;  %s3203_s18 = sphi %s3255_s18, %s5137_s18   ;;  %s3199_s17 = sphi %s3253_s17, %s5136_s17   ;;  %s3195_s16 = sphi %s3251_s16, %s5135_s16   ;;  %s3191_s15 = sphi %s3249_s15, %s5134_s15  }
   0x7   : > { %p34_p0 = scmp.ge.s32.totalorder %s32_s22, 2  ;;  %s41_s23 = sadd.s32 1, %s3199_s17 }
   0x8   : > { %p48_p1 = scmp.ne.s32.totalorder %s3199_s17, %s3195_s16  ;;  %p49_p2 = scmp.eq.s32.totalorder %s3211_s20, 0 }
   0x9   : > { %s5140_s22 = smov (%p34_p0, %s32_s22), 0  ;;  %p54_p4 = scmp.ne.s32.totalorder %s3195_s16, %s3191_s15 }
   0xa   : > { %p3285_p3 = por %p49_p2, %p48_p1  ;;  %s36_s25 = ssub.s32 %s3207_s19, %s5140_s22 }
   0xb   : > { %p55_p5 = scmp.eq.s32.totalorder %s2908_s21, 0  ;;  %p39_p6 = scmp.eq.s32.totalorder %s36_s25, 0 }
   0xc   : > { %p3015_p8 = scmp.lt.s32.totalorder %s3211_s20, 2  ;;  %s3301_s28 = sand.u32 1, %s3199_s17  }
   0xd   : > { %p3292_p7 = por %p55_p5, %p54_p4  ;;  %s3001_s29 = sshll.u32 %s3207_s19, 9 }
   0xe   : > { %s3298_s27 = scalar_select %p39_p6, %s3199_s17, %s41_s23  }
   0xf   : > { %s4961_s26 = scalar_select %p3292_p7, 1, 0 }
  0x10   : > { %s2912_s30 = sshll.u32 %s3301_s28, 5  ;;  %s3308_s7 = scalar_lea.hbm %s4949_s0, %s3001_s29 }
  0x11   : > { %s186_s8 = scalar_lea.vmem [#allocation2], %s2912_s30  ;;  %p3312_p9 = pnand %p3015_p8, %p3285_p3 }
  0x12   : > { %s196_s9 = sshll.u32 %s186_s8, 4  ;;  %s183_s11 = scalar_lea.sflag [#allocation3], %s3301_s28  ;;  %s3316_s9 = int_to_ptr.vmem [resolvable:$true] %s196_s9 }
  0x13   : > { %s3097_s12 = scalar_lea.hbm %s3308_s7, 512  ;;  %p3099_p13 = pneg %p3312_p9 }
  0x14   : > { %p3098_p12 = scmp.ne.s32.totalorder %s3308_s7, %s3097_s12  ;;  %s3102_s15 = scalar_lea.hbm %s4949_s0, 1024 }
  0x15   : > { %p3103_p2 = scmp.lt.u32.totalorder %s3308_s7, %s4949_s0  ;;  %p3104_p3 = scmp.lt.u32.totalorder %s3102_s15, %s3097_s12 }
  0x16   : > { %p3100_p0 = pnand %p3099_p13, %p3098_p12  ;;  %p3106_p5 = scmp.lt.u32.totalorder %s3097_s12, %s3308_s7 }
  0x17   : > { %p3105_p4 = por %p3104_p3, %p3103_p2 }
  0x18   : > { %p3101_p1 = pneg %p3100_p0 }
  0x19   : > { %p3107_p6 = por %p3106_p5, %p3105_p4 }
  0x1b   : > { %p3108_p8 = pnand %p3107_p6, %p3101_p1 }
  0x1d   : > { %3111 = shalt.err (!%p3108_p8)
}
  0x1e   : > { %s3112_s24 = scalar_lea.vmem %s3316_s9, 512  ;;  %s3213_s25 = smov [#allocation2]  }
  0x1f   : > { %p3113_p12 = scmp.ne.s32.totalorder %s3316_s9, %s3112_s24  ;;  %s3117_s29 = sshll.u32 %s3213_s25, 4  ;;  %s3118_s29 = int_to_ptr.vmem [resolvable:$false] %s3117_s29 }
  0x20   : > { %s3119_s30 = scalar_lea.vmem %s3118_s29, 1024  ;;  %p3120_p11 = scmp.lt.s32.totalorder %s3316_s9, %s3118_s29 }
  0x21   : > { %p3115_p0 = pnand %p3113_p12, %p3099_p13  ;;  %p3121_p2 = scmp.lt.s32.totalorder %s3119_s30, %s3112_s24 }
  0x23   : > { %p3116_p10 = pneg %p3115_p0  ;;  %p3122_p3 = por %p3121_p2, %p3120_p11 }
  0x25   : > { %p3123_p4 = pnand %p3122_p3, %p3116_p10 }
  0x27   : > { %3126 = shalt.err (!%p3123_p4)
}
  0x28   : > { %3011 = dma.hbm_to_vmem [thread:$0]  (!%p3312_p9), %s3308_s7, 512, %s3316_s9, %s183_s11  }
  0x29   : > { %p4963_p1 = scmp.lt.s32.totalorder %s3211_s20, 3  ;;  %p4964_p5 = scmp.ge.s32.totalorder %s3211_s20, 1 }
  0x2a   : > { %s2915_s6 = sshll.u32 %s3301_s28, 8  ;;  %s3002_s8 = sshll.u32 %s3207_s19, 12 }
  0x2b   : > { %p3350_p6 = pnand %p4964_p5, %p4963_p1  ;;  %s3359_s14 = scalar_lea.hbm %s4950_s1, %s3002_s8 }
  0x2c   : > { %s207_s15 = scalar_lea.vmem [#allocation4], %s2915_s6  ;;  %s204_s7 = scalar_lea.sflag [#allocation5], %s3301_s28 }
  0x2d   : > { %s216_s21 = sshll.u32 %s207_s15, 4  ;;  %s3127_s9 = scalar_lea.hbm %s3359_s14, 4096  ;;  %s3361_s21 = int_to_ptr.vmem [resolvable:$true] %s216_s21 }
  0x2e   : > { %p3128_p10 = scmp.ne.s32.totalorder %s3359_s14, %s3127_s9  ;;  %s3132_s24 = scalar_lea.hbm %s4950_s1, 8192 }
  0x2f   : > { %p3133_p12 = scmp.lt.u32.totalorder %s3359_s14, %s4950_s1  ;;  %p3134_p0 = scmp.lt.u32.totalorder %s3132_s24, %s3127_s9 }
  0x30   : > { %p3130_p11 = pnand %p3128_p10, %p3099_p13  ;;  %p3136_p3 = scmp.lt.u32.totalorder %s3127_s9, %s3359_s14 }
  0x31   : > { %p3135_p2 = por %p3134_p0, %p3133_p12 }
  0x32   : > { %p3131_p8 = pneg %p3130_p11 }
  0x33   : > { %p3137_p4 = por %p3136_p3, %p3135_p2 }
  0x35   : > { %p3138_p1 = pnand %p3137_p4, %p3131_p8 }
  0x37   : > { %3141 = shalt.err (!%p3138_p1)
}
  0x38   : > { %s3142_s30 = scalar_lea.vmem %s3361_s21, 4096  ;;  %s3214_s6 = smov [#allocation4]  }
  0x39   : > { %p3143_p5 = scmp.ne.s32.totalorder %s3361_s21, %s3142_s30  ;;  %s3147_s8 = sshll.u32 %s3214_s6, 4  ;;  %s3148_s8 = int_to_ptr.vmem [resolvable:$false] %s3147_s8 }
  0x3a   : > { %s3149_s12 = scalar_lea.vmem %s3148_s8, 8192  ;;  %p3150_p7 = scmp.lt.s32.totalorder %s3361_s21, %s3148_s8 }
  0x3b   : > { %p3145_p10 = pnand %p3143_p5, %p3099_p13  ;;  %p3151_p12 = scmp.lt.s32.totalorder %s3149_s12, %s3142_s30 }
  0x3d   : > { %p3146_p11 = pneg %p3145_p10  ;;  %p3152_p0 = por %p3151_p12, %p3150_p7 }
  0x3f   : > { %p3153_p2 = pnand %p3152_p0, %p3146_p11 }
  0x41   : > { %3156 = shalt.err (!%p3153_p2)
}
  0x42   : > { %s3215_s13 = smov 1024   ;;  %s3216_s15 = smov 64  }
  0x43   : > { %3014 = dma.hbm_to_vmem [thread:$0]  (!%p3312_p9), %s3359_s14, 4096, %s3361_s21, %s204_s7, %s3215_s13, %s3215_s13, %s3216_s15  }
  0x44   : > { %228 = sbr.rel (%p3350_p6) target bundleno = 861 (0x35d), region = 36 }
  0x4b   : > { %s230_s9 = sand.u32 1, %s3195_s16   ;;  %p4966_p7 = scmp.ne.s32.totalorder %s4961_s26, 0 }
  0x4c   : > { %s2919_s11 = sshll.u32 %s230_s9, 5  ;;  %s231_s23 = scalar_lea.sflag [#allocation3], %s230_s9 }
  0x4d   : > { %s3392_s24 = scalar_lea.vmem [#allocation2], %s2919_s11 }
  0x4e   : > { %3182 = dma.done.wait (%p4966_p7), %s231_s23, 512  }
  0x4f   : > { %3184 = vsyncadd (%p4966_p7), %s231_s23, 4294966784  ;;  %s2920_s25 = sshll.u32 %s230_s9, 8  ;;  %s240_s10 = scalar_lea.sflag [#allocation5], %s230_s9 }
  0x50   : > { %s3398_s28 = scalar_lea.vmem [#allocation4], %s2920_s25 }
  0x51   : > { %3186 = dma.done.wait (%p4966_p7), %s240_s10, 4096  }
  0x52   : > { %3188 = vsyncadd (%p4966_p7), %s240_s10, 4294963200  ;;  %v4955_v0 = vmov 0   ;;  %v3218_v1 = vmov 6   ;;  %v3219_v2 = vmov 5   ;;  %v298_v3 = vld [vmem:[%s3398_s28] sm:$0xff]  ;;  %v299_v5 = vld [vmem:[%s3398_s28 + $0x8] sm:$0xff] }
  0x53   : > { %775 = vmatprep.mubr.bf16.mxu0 %v4955_v0  ;;  %828 = vmatprep.mubr.bf16.mxu1 %v4955_v0  ;;  %v306_v4 = vld [vmem:[%s3398_s28 + $0x40] sm:$0xff]  ;;  %v307_v7 = vld [vmem:[%s3398_s28 + $0x48] sm:$0xff]  ;;  %v300_v17 = vld [vmem:[%s3398_s28 + $0x10] sm:$0xff]  ;;  %vm736_vm0 = vcmask 261120   ;;  %p280_p9 = scmp.lt.s32.totalorder %s3203_s18, 1 }
  0x54   : > { %3074 = vset.pattern.permute.xlu1 %v3218_v1  ;;  %3073 = vset.pattern.permute.xlu0 %v3219_v2  ;;  %v2926_v6 = vcombine.high %v298_v3, %v306_v4  ;;  %v2925_v8 = vcombine.low %v298_v3, %v306_v4  ;;  %v314_v9 = vld [vmem:[%s3398_s28 + $0x80] sm:$0xff]  ;;  %v2928_v11 = vcombine.high %v299_v5, %v307_v7  ;;  %v315_v14 = vld [vmem:[%s3398_s28 + $0x88] sm:$0xff]  ;;  %v308_v19 = vld [vmem:[%s3398_s28 + $0x50] sm:$0xff] }
  0x55   : > { %v322_v10 = vld [vmem:[%s3398_s28 + $0xc0] sm:$0xff]  ;;  %v2927_v12 = vcombine.low %v299_v5, %v307_v7  ;;  %v323_v15 = vld [vmem:[%s3398_s28 + $0xc8] sm:$0xff]  ;;  %v301_v20 = vld [vmem:[%s3398_s28 + $0x18] sm:$0xff]  ;;  %v2930_v23 = vcombine.high %v300_v17, %v308_v19  ;;  %v2929_v28 = vcombine.low %v300_v17, %v308_v19  ;;  %v3220_v7 = vmov 1   ;;  %s5142_s18 = smov (!%p280_p9, %s3203_s18), 1 }
  0x56   : > { %v2942_v13 = vcombine.high %v314_v9, %v322_v10  ;;  %743 = vmatprep.subr.bf16.mxu0 %v2926_v6  ;;  %v2944_v16 = vcombine.high %v315_v14, %v323_v15  ;;  %796 = vmatprep.subr.bf16.mxu1 %v2928_v11  ;;  %v2941_v18 = vcombine.low %v314_v9, %v322_v10  ;;  %v309_v21 = vld [vmem:[%s3398_s28 + $0x58] sm:$0xff]  ;;  %v3423_v25 = vld [vmem:[%s4951_s2] sm:$0xff]   ;;  %v316_v26 = vld [vmem:[%s3398_s28 + $0x90] sm:$0xff]  ;;  %v358_v11 = vlaneseq  ;;  %s3003_s5 = sshll.u32 %s5142_s18, 6 }
  0x57   : > { %744 = vmatpush1.bf16.msra.mxu0 %v2925_v8  ;;  %797 = vmatpush1.bf16.msra.mxu1 %v2927_v12  ;;  %v2943_v22 = vcombine.low %v315_v14, %v323_v15  ;;  %v2932_v24 = vcombine.high %v301_v20, %v309_v21  ;;  %v324_v27 = vld [vmem:[%s3398_s28 + $0xd0] sm:$0xff]  ;;  %v317_v29 = vld [vmem:[%s3398_s28 + $0x98] sm:$0xff]  ;;  %v2931_v31 = vcombine.low %v301_v20, %v309_v21  ;;  %v302_v33 = vld [vmem:[%s3398_s28 + $0x20] sm:$0xff]  ;;  %s4921_s7 = scalar_lea.vmem %s4953_s4, %s3003_s5 }
  0x58   : > { %745 = vmatprep.subr.bf16.mxu0 %v2942_v13  ;;  %798 = vmatprep.subr.bf16.mxu1 %v2944_v16  ;;  %v325_v30 = vld [vmem:[%s3398_s28 + $0xd8] sm:$0xff]  ;;  %v2946_v32 = vcombine.high %v316_v26, %v324_v27  ;;  %v310_v34 = vld [vmem:[%s3398_s28 + $0x60] sm:$0xff]  ;;  %v303_v36 = vld [vmem:[%s3398_s28 + $0x28] sm:$0xff]  ;;  %v2945_v38 = vcombine.low %v316_v26, %v324_v27  ;;  %v359_v12 = vshrl.u32 %v358_v11, 7 }
  0x59   : > { %v2948_v35 = vcombine.high %v317_v29, %v325_v30  ;;  %v311_v37 = vld [vmem:[%s3398_s28 + $0x68] sm:$0xff]  ;;  %v3440_v39 = vld [vmem:[%s4952_s3] sm:$0xff]  ;;  %v2947_v40 = vcombine.low %v317_v29, %v325_v30  ;;  %v2934_v41 = vcombine.high %v302_v33, %v310_v34  ;;  %v3466_v45 = vld [vmem:[%s4952_s3 + $0x18] sm:$0xff]  ;;  %v2933_v49 = vcombine.low %v302_v33, %v310_v34 }
  0x5a   : > { %v2936_v42 = vcombine.high %v303_v36, %v311_v37  ;;  %v3447_v43 = vld [vmem:[%s4951_s2 + $0x8] sm:$0xff]   ;;  %1168 = vperm.xlu1 %3074, %v3440_v39   ;;  %336 = vperm.xlu0 %3073, %v3440_v39   ;;  %v3472_v46 = vld [vmem:[%s4952_s3 + $0x10] sm:$0xff]  ;;  %v318_v47 = vld [vmem:[%s3398_s28 + $0xa0] sm:$0xff]  ;;  %v2935_v52 = vcombine.low %v303_v36, %v311_v37  ;;  %v3540_v13 = vsub.s32 5, %v359_v12  ;;  %v3542_v14 = vsub.s32 3, %v359_v12 }
  0x5b   : > { %746 = vmatpush1.bf16.msra.mxu0 %v2941_v18  ;;  %799 = vmatpush1.bf16.msra.mxu1 %v2943_v22  ;;  %v3453_v44 = vld [vmem:[%s4952_s3 + $0x8] sm:$0xff]  ;;  %v326_v48 = vld [vmem:[%s3398_s28 + $0xe0] sm:$0xff]  ;;  %v304_v54 = vld [vmem:[%s3398_s28 + $0x30] sm:$0xff]  ;;  %v3544_v15 = vsub.s32 7, %v359_v12  ;;  %v3547_v17 = vsub.s32 1, %v359_v12  ;;  %v3559_v26 = vsub.s32 6, %v359_v12 }
  0x5c   : > { %849 = vmatprep.subr.bf16.mxu0 %v2930_v23  ;;  %902 = vmatprep.subr.bf16.mxu1 %v2932_v24  ;;  %v319_v50 = vld [vmem:[%s3398_s28 + $0xa8] sm:$0xff]  ;;  %v2950_v53 = vcombine.high %v318_v47, %v326_v48  ;;  %v312_v55 = vld [vmem:[%s3398_s28 + $0x70] sm:$0xff]  ;;  %v305_v57 = vld [vmem:[%s3398_s28 + $0x38] sm:$0xff]  ;;  %v2949_v59 = vcombine.low %v318_v47, %v326_v48  ;;  %v3555_v24 = vsub.s32 4, %v359_v12  ;;  %v3561_v27 = vsub.s32 0, %v359_v12 }
  0x5d   : > { %v327_v51 = vld [vmem:[%s3398_s28 + $0xe8] sm:$0xff]  ;;  %v313_v58 = vld [vmem:[%s3398_s28 + $0x78] sm:$0xff]  ;;  %v2938_v61 = vcombine.high %v304_v54, %v312_v55  ;;  %v320_v63 = vld [vmem:[%s3398_s28 + $0xb0] sm:$0xff] }
  0x5e   : > { %2957 = vmatmul.mubr.msk.bf16.vlgmr.msra.gmra.mrb[0].mxu0 %vm736_vm0, %v3423_v25  ;;  %2959 = vmatmul.mubr.msk.bf16.vlgmr.msra.gmra.mrb[0].mxu1 %vm736_vm0, %v3423_v25  ;;  %v2952_v56 = vcombine.high %v319_v50, %v327_v51  ;;  %v2951_v60 = vcombine.low %v319_v50, %v327_v51  ;;  %v2940_v62 = vcombine.high %v305_v57, %v313_v58  ;;  %v321_v3 = vld [vmem:[%s3398_s28 + $0xb8] sm:$0xff] }
  0x5f   : > { %850 = vmatpush1.bf16.msra.mxu0 %v2929_v28  ;;  %903 = vmatpush1.bf16.msra.mxu1 %v2931_v31  ;;  %v329_v4 = vld [vmem:[%s3398_s28 + $0xf8] sm:$0xff]  ;;  %v2939_v5 = vcombine.low %v305_v57, %v313_v58 }
  0x60   : > { %785 = vmatprep.mubr.bf16.mxu0 %v4955_v0  ;;  %838 = vmatprep.mubr.bf16.mxu1 %v4955_v0  ;;  %v2956_v8 = vcombine.high %v321_v3, %v329_v4  ;;  %v2955_v10 = vcombine.low %v321_v3, %v329_v4  ;;  %v297_v16 = vld [vmem:[%s3392_s24 + $0x18] sm:$0xff] }
  0x61   : > { %851 = vmatprep.subr.bf16.mxu0 %v2946_v32  ;;  %904 = vmatprep.subr.bf16.mxu1 %v2948_v35  ;;  %v1242_v18 = vrot.slane %v297_v16, %v3540_v13  ;;  %v1238_v20 = vrot.slane %v297_v16, %v3542_v14  ;;  %v1246_v21 = vrot.slane %v297_v16, %v3544_v15 }
  0x62   : > { %1172 = vperm.xlu1 %3074, %v3453_v44   ;;  %341 = vperm.xlu0 %3073, %v3453_v44   ;;  %v417_v28 = vrot.slane %v297_v16, %v3555_v24  ;;  %v421_v31 = vrot.slane %v297_v16, %v3559_v26  ;;  %v1234_v36 = vrot.slane %v297_v16, %v3547_v17 }
  0x63   : > { %852 = vmatpush1.bf16.msra.mxu0 %v2945_v38  ;;  %905 = vmatpush1.bf16.msra.mxu1 %v2947_v40  ;;  %v1322_v19 = vrot.slane %v1242_v18, %v3547_v17  ;;  %v1318_v22 = vrot.slane %v1238_v20, %v3547_v17  ;;  %v1326_v23 = vrot.slane %v1246_v21, %v3547_v17 }
  0x64   : > { %955 = vmatprep.subr.bf16.mxu0 %v2934_v41  ;;  %1008 = vmatprep.subr.bf16.mxu1 %v2936_v42  ;;  %v497_v29 = vrot.slane %v417_v28, %v3561_v27  ;;  %v501_v33 = vrot.slane %v421_v31, %v3561_v27  ;;  %v409_v38 = vrot.slane %v297_v16, %v3561_v27  ;;  %v294_v31 = vld [vmem:[%s3392_s24] sm:$0xff] }
  0x65   : > { %v1314_v41 = vrot.slane %v1234_v36, %v3547_v17  ;;  %v295_v36 = vld [vmem:[%s3392_s24 + $0x8] sm:$0xff] }
  0x66   : > { %2958 = vmatmul.mubr.msk.bf16.gmra.mrb[4].mxu0 %vm736_vm0, %v3447_v43  ;;  %2960 = vmatmul.mubr.msk.bf16.gmra.mrb[4].mxu1 %vm736_vm0, %v3447_v43  ;;  %v489_v42 = vrot.slane %v409_v38, %v3561_v27  ;;  %v1194_v38 = vrot.slane %v294_v31, %v3540_v13 }
  0x67   : > { %881 = vmatprep.mubr.bf16.mxu0 %v4955_v0  ;;  %934 = vmatprep.mubr.bf16.mxu1 %v4955_v0 }
  0x68   : > { %3075 = vset.pattern.permute.xlu1 %v3219_v2  ;;  %346 = vperm.xlu0 %3073, %v3472_v46   ;;  %v328_v2 = vld [vmem:[%s3398_s28 + $0xf0] sm:$0xff] }
  0x69   : > { %351 = vperm.xlu1 %3075, %v3466_v45   ;;  %v2954_v6 = vcombine.high %v320_v63, %v328_v2  ;;  %v2953_v9 = vcombine.low %v320_v63, %v328_v2 }
  0x6c   : > { %3076 = vset.pattern.permute.xlu0 %v3218_v1 }
  0x6d   : > { %3077 = vset.pattern.permute.xlu1 %v3218_v1  ;;  %1176 = vperm.xlu0 %3076, %v3472_v46   ;;  %v2937_v1 = vcombine.low %v304_v54, %v312_v55 }
  0x6e   : > { %2961 = vmatmul.mubr.msk.bf16.vlgmr.msra.gmra.mrb[8].mxu0 %vm736_vm0, %v3423_v25  ;;  %2963 = vmatmul.mubr.msk.bf16.vlgmr.msra.gmra.mrb[8].mxu1 %vm736_vm0, %v3423_v25 }
  0x6f   : > { %956 = vmatpush1.bf16.msra.mxu0 %v2933_v49  ;;  %1009 = vmatpush1.bf16.msra.mxu1 %v2935_v52 }
  0x70   : > { %891 = vmatprep.mubr.bf16.mxu0 %v4955_v0  ;;  %944 = vmatprep.mubr.bf16.mxu1 %v4955_v0 }
  0x71   : > { %957 = vmatprep.subr.bf16.mxu0 %v2950_v53  ;;  %1010 = vmatprep.subr.bf16.mxu1 %v2952_v56 }
  0x72   : > { %1180 = vperm.xlu1 %3077, %v3466_v45   ;;  %3079 = vset.pattern.permute.xlu0 %v4955_v0 }
  0x73   : > { %958 = vmatpush1.bf16.msra.mxu0 %v2949_v59  ;;  %1011 = vmatpush1.bf16.msra.mxu1 %v2951_v60 }
  0x74   : > { %1061 = vmatprep.subr.bf16.mxu0 %v2938_v61  ;;  %1114 = vmatprep.subr.bf16.mxu1 %v2940_v62 }
  0x75   : > { %1460 = vperm.xlu0 %3079, %v3453_v44  }
  0x76   : > { %2962 = vmatmul.mubr.msk.bf16.gmra.mrb[12].mxu0 %vm736_vm0, %v3447_v43  ;;  %2964 = vmatmul.mubr.msk.bf16.gmra.mrb[12].mxu1 %vm736_vm0, %v3447_v43 }
  0x77   : > { %987 = vmatprep.mubr.bf16.mxu0 %v4955_v0  ;;  %1040 = vmatprep.mubr.bf16.mxu1 %v4955_v0 }
  0x78   : > { %3078 = vset.pattern.permute.xlu1 %v4955_v0 }
  0x79   : > { %1456 = vperm.xlu1 %3078, %v3440_v39   ;;  %1464 = vperm.xlu0 %3079, %v3472_v46  }
  0x7d   : > { %3080 = vset.pattern.permute.xlu1 %v3220_v7  ;;  %3082 = vset.pattern.permute.xlu0 %v3220_v7 }
  0x7e   : > { %2965 = vmatmul.mubr.msk.bf16.vlgmr.msra.gmra.mrb[16].mxu0 %vm736_vm0, %v3423_v25  ;;  %1536 = vperm.xlu1 %3080, %v3440_v39  }
  0x7f   : > { %2967 = vmatmul.mubr.msk.bf16.vlgmr.msra.gmra.mrb[16].mxu1 %vm736_vm0, %v3423_v25  ;;  %1062 = vmatpush1.bf16.msra.mxu0 %v2937_v1 }
  0x80   : > { %1115 = vmatpush1.bf16.msra.mxu1 %v2939_v5  ;;  %997 = vmatprep.mubr.bf16.mxu0 %v4955_v0 }
  0x81   : > { %1050 = vmatprep.mubr.bf16.mxu1 %v4955_v0  ;;  %1063 = vmatprep.subr.bf16.mxu0 %v2954_v6 }
  0x82   : > { %1116 = vmatprep.subr.bf16.mxu1 %v2956_v8  ;;  %1540 = vperm.xlu1 %3080, %v3453_v44  }
  0x83   : > { %1064 = vmatpush1.bf16.msra.mxu0 %v2953_v9  ;;  %1544 = vperm.xlu0 %3082, %v3472_v46  }
  0x84   : > { %1117 = vmatpush1.bf16.msra.mxu1 %v2955_v10 }
  0x86   : > { %2966 = vmatmul.mubr.msk.bf16.gmra.mrb[20].mxu0 %vm736_vm0, %v3447_v43  ;;  %3081 = vset.pattern.permute.xlu1 %v4955_v0 }
  0x87   : > { %2968 = vmatmul.mubr.msk.bf16.gmra.mrb[20].mxu1 %vm736_vm0, %v3447_v43  ;;  %1093 = vmatprep.mubr.bf16.mxu0 %v4955_v0 }
  0x88   : > { %1146 = vmatprep.mubr.bf16.mxu1 %v4955_v0  ;;  %1468 = vperm.xlu1 %3081, %v3466_v45  }
  0x8c   : > { %3083 = vset.pattern.permute.xlu1 %v3220_v7 }
  0x8d   : > { %1548 = vperm.xlu1 %3083, %v3466_v45  }
  0x8e   : > { %2969 = vmatmul.mubr.msk.bf16.vlgmr.msra.gmra.mrb[24].mxu0 %vm736_vm0, %v3423_v25 }
  0x8f   : > { %2971 = vmatmul.mubr.msk.bf16.vlgmr.msra.gmra.mrb[24].mxu1 %vm736_vm0, %v3423_v25  ;;  %1103 = vmatprep.mubr.bf16.mxu0 %v4955_v0  ;;  %v3557_v25 = vsub.s32 2, %v359_v12 }
  0x90   : > { %1156 = vmatprep.mubr.bf16.mxu1 %v4955_v0 }
  0x91   : > { %v413_v30 = vrot.slane %v297_v16, %v3557_v25 }
  0x93   : > { %v493_v32 = vrot.slane %v413_v30, %v3561_v27 }
  0x96   : > { %2970 = vmatmul.mubr.msk.bf16.gmra.mrb[28].mxu0 %vm736_vm0, %v3447_v43 }
  0x97   : > { %2972 = vmatmul.mubr.msk.bf16.gmra.mrb[28].mxu1 %vm736_vm0, %v3447_v43  ;;  %1763 = vmatprep.mubr.bf16.mxu0 %v4955_v0 }
  0x98   : > { %1816 = vmatprep.mubr.bf16.mxu1 %v4955_v0 }
  0xd9   : > { %v3569_v34 = vpop.permute.xlu0 %336  ;;  %v3571_v35 = vpop.permute.xlu1 %1168 }
  0xda   : > { %v3586_v48 = vmul.f32 %v489_v42, %v3569_v34  ;;  %v3589_v49 = vmul.f32 %v1314_v41, %v3571_v35  ;;  %v3592_v50 = vmul.f32 %v497_v29, %v3569_v34  ;;  %v3595_v51 = vmul.f32 %v1322_v19, %v3571_v35 }
  0xdb   : > { %v3598_v52 = vmul.f32 %v493_v32, %v3569_v34  ;;  %v3601_v53 = vmul.f32 %v1318_v22, %v3571_v35  ;;  %v3604_v54 = vmul.f32 %v501_v33, %v3569_v34  ;;  %v3607_v55 = vmul.f32 %v1326_v23, %v3571_v35 }
  0xdc   : > { %4967 = vst [vmem:[#allocation8_spill] sm:$0xff] %v3586_v48  ;;  %4968 = vst [vmem:[#allocation9_spill] sm:$0xff] %v3589_v49  ;;  %v4957_v49 = vmov 2  }
  0xdd   : > { %4969 = vst [vmem:[#allocation10_spill] sm:$0xff] %v3592_v50  ;;  %4970 = vst [vmem:[#allocation11_spill] sm:$0xff] %v3595_v51  ;;  %3084 = vset.pattern.permute.xlu1 %v4957_v49  ;;  %3085 = vset.pattern.permute.xlu0 %v4957_v49 }
  0xde   : > { %4971 = vst [vmem:[#allocation12_spill] sm:$0xff] %v3598_v52  ;;  %4972 = vst [vmem:[#allocation13_spill] sm:$0xff] %v3601_v53  ;;  %2156 = vperm.xlu1 %3084, %v3440_v39   ;;  %2160 = vperm.xlu0 %3085, %v3453_v44  }
  0xdf   : > { %4973 = vst [vmem:[#allocation14_spill] sm:$0xff] %v3604_v54  ;;  %4974 = vst [vmem:[#allocation15_spill] sm:$0xff] %v3607_v55 }
  0xe1   : > { %v3574_v37 = vpop.permute.xlu0 %341  ;;  %v3577_v40 = vpop.permute.xlu1 %1172 }
  0xe2   : > { %v3610_v56 = vmul.f32 %v489_v42, %v3574_v37  ;;  %v3613_v57 = vmul.f32 %v1314_v41, %v3577_v40  ;;  %v3616_v58 = vmul.f32 %v497_v29, %v3574_v37  ;;  %v3619_v59 = vmul.f32 %v1322_v19, %v3577_v40  ;;  %2164 = vperm.xlu0 %3085, %v3472_v46  }
  0xe3   : > { %v3624_v61 = vmul.f32 %v493_v32, %v3574_v37  ;;  %v3627_v62 = vmul.f32 %v1318_v22, %v3577_v40  ;;  %v3630_v63 = vmul.f32 %v501_v33, %v3574_v37  ;;  %v3633_v2 = vmul.f32 %v1326_v23, %v3577_v40 }
  0xe4   : > { %4975 = vst [vmem:[#allocation16_spill] sm:$0xff] %v3610_v56  ;;  %4976 = vst [vmem:[#allocation17_spill] sm:$0xff] %v3613_v57 }
  0xe5   : > { %4977 = vst [vmem:[#allocation18_spill] sm:$0xff] %v3616_v58  ;;  %4978 = vst [vmem:[#allocation19_spill] sm:$0xff] %v3619_v59 }
  0xe6   : > { %4979 = vst [vmem:[#allocation20_spill] sm:$0xff] %v3624_v61  ;;  %4980 = vst [vmem:[#allocation21_spill] sm:$0xff] %v3627_v62 }
  0xe7   : > { %v3583_v47 = vpop.permute.xlu0 %346  ;;  %4981 = vst [vmem:[#allocation22_spill] sm:$0xff] %v3630_v63  ;;  %4982 = vst [vmem:[#allocation23_spill] sm:$0xff] %v3633_v2 }
  0xe8   : > { %v3581_v43 = vpop.permute.xlu1 %351  ;;  %v3636_v1 = vmul.f32 %v489_v42, %v3583_v47  ;;  %v3642_v4 = vmul.f32 %v497_v29, %v3583_v47  ;;  %v3650_v7 = vmul.f32 %v493_v32, %v3583_v47  ;;  %v3656_v9 = vmul.f32 %v501_v33, %v3583_v47 }
  0xe9   : > { %v3662_v11 = vmul.f32 %v489_v42, %v3581_v43  ;;  %v3668_v16 = vmul.f32 %v497_v29, %v3581_v43  ;;  %v3674_v20 = vmul.f32 %v493_v32, %v3581_v43  ;;  %v3680_v28 = vmul.f32 %v501_v33, %v3581_v43 }
  0xea   : > { %4983 = vst [vmem:[#allocation24_spill] sm:$0xff] %v3636_v1  ;;  %4985 = vst [vmem:[#allocation26_spill] sm:$0xff] %v3642_v4  ;;  %v361_v29 = vrot.slane %v294_v31, %v3561_v27  ;;  %v1190_v32 = vrot.slane %v294_v31, %v3542_v14  ;;  %v1210_v33 = vrot.slane %v295_v36, %v3540_v13 }
  0xeb   : > { %4987 = vst [vmem:[#allocation28_spill] sm:$0xff] %v3650_v7  ;;  %4989 = vst [vmem:[#allocation30_spill] sm:$0xff] %v3656_v9 }
  0xec   : > { %v3621_v60 = vpop.permute.xlu0 %1176  ;;  %4991 = vst [vmem:[#allocation32_spill] sm:$0xff] %v3662_v11  ;;  %4993 = vst [vmem:[#allocation34_spill] sm:$0xff] %v3668_v16  ;;  %v3696_v42 = vrot.slane %v361_v29, %v3561_v27  ;;  %v296_v29 = vld [vmem:[%s3392_s24 + $0x10] sm:$0xff]  ;;  %v373_v16 = vrot.slane %v294_v31, %v3559_v26  ;;  %v381_v11 = vrot.slane %v295_v36, %v3557_v25 }
  0xed   : > { %v3639_v3 = vmul.f32 %v1314_v41, %v3621_v60  ;;  %v3645_v5 = vmul.f32 %v1322_v19, %v3621_v60  ;;  %v3653_v8 = vmul.f32 %v1318_v22, %v3621_v60  ;;  %v3659_v10 = vmul.f32 %v1326_v23, %v3621_v60  ;;  %4995 = vst [vmem:[#allocation36_spill] sm:$0xff] %v3674_v20 }
  0xee   : > { %4997 = vst [vmem:[#allocation38_spill] sm:$0xff] %v3680_v28  ;;  %v3714_v28 = vrot.slane %v1210_v33, %v3547_v17  ;;  %v369_v20 = vrot.slane %v294_v31, %v3555_v24  ;;  %v389_v33 = vrot.slane %v295_v36, %v3559_v26  ;;  %v1222_v9 = vrot.slane %v296_v29, %v3542_v14 }
  0xef   : > { %4984 = vst [vmem:[#allocation25_spill] sm:$0xff] %v3639_v3  ;;  %4986 = vst [vmem:[#allocation27_spill] sm:$0xff] %v3645_v5  ;;  %v401_v7 = vrot.slane %v296_v29, %v3555_v24  ;;  %v1230_v5 = vrot.slane %v296_v29, %v3544_v15  ;;  %v3871_v53 = vmul.f32 %v3696_v42, %v3574_v37 }
  0xf0   : > { %4988 = vst [vmem:[#allocation29_spill] sm:$0xff] %v3653_v8  ;;  %4990 = vst [vmem:[#allocation31_spill] sm:$0xff] %v3659_v10  ;;  %v1218_v10 = vrot.slane %v296_v29, %v3547_v17  ;;  %v1226_v8 = vrot.slane %v296_v29, %v3540_v13  ;;  %v449_v3 = vrot.slane %v369_v20, %v3561_v27 }
  0xf1   : > { %v3647_v6 = vpop.permute.xlu1 %1180  ;;  %v405_v13 = vrot.slane %v296_v29, %v3559_v26  ;;  %v3867_v54 = vmul.f32 %v3714_v28, %v3577_v40 }
  0xf2   : > { %v3665_v12 = vmul.f32 %v1314_v41, %v3647_v6  ;;  %v3671_v18 = vmul.f32 %v1322_v19, %v3647_v6  ;;  %v3677_v21 = vmul.f32 %v1318_v22, %v3647_v6  ;;  %v3683_v30 = vmul.f32 %v1326_v23, %v3647_v6 }
  0xf3   : > { %v1186_v19 = vrot.slane %v294_v31, %v3547_v17  ;;  %v1198_v22 = vrot.slane %v294_v31, %v3544_v15  ;;  %v1202_v41 = vrot.slane %v295_v36, %v3547_v17  ;;  %v1206_v23 = vrot.slane %v295_v36, %v3542_v14  ;;  %5005 = vst [vmem:[#allocation46_spill] sm:$0xff] %v3867_v54 }
  0xf4   : > { %4992 = vst [vmem:[#allocation33_spill] sm:$0xff] %v3665_v12  ;;  %4994 = vst [vmem:[#allocation35_spill] sm:$0xff] %v3671_v18  ;;  %v3744_v14 = vrot.slane %v373_v16, %v3561_v27  ;;  %v3759_v20 = vrot.slane %v1218_v10, %v3547_v17  ;;  %v3762_v26 = vrot.slane %v1226_v8, %v3547_v17 }
  0xf5   : > { %4996 = vst [vmem:[#allocation37_spill] sm:$0xff] %v3677_v21  ;;  %4998 = vst [vmem:[#allocation39_spill] sm:$0xff] %v3683_v30  ;;  %v3699_v0 = vrot.slane %v1186_v19, %v3547_v17  ;;  %v3702_v30 = vrot.slane %v1194_v38, %v3547_v17  ;;  %v3705_v21 = vrot.slane %v1190_v32, %v3547_v17 }
  0xf6   : > { %v3708_v18 = vrot.slane %v1198_v22, %v3547_v17  ;;  %v3711_v12 = vrot.slane %v1202_v41, %v3547_v17  ;;  %v365_v19 = vrot.slane %v294_v31, %v3557_v25  ;;  %v3720_v38 = vrot.slane %v1206_v23, %v3547_v17 }
  0xf7   : > { %v1214_v32 = vrot.slane %v295_v36, %v3544_v15  ;;  %v377_v22 = vrot.slane %v295_v36, %v3561_v27  ;;  %v385_v41 = vrot.slane %v295_v36, %v3555_v24  ;;  %v393_v23 = vrot.slane %v296_v29, %v3561_v27 }
  0xf8   : > { %v397_v31 = vrot.slane %v296_v29, %v3557_v25  ;;  %v3737_v2 = vrot.slane %v365_v19, %v3561_v27  ;;  %v3753_v15 = vrot.slane %v381_v11, %v3561_v27  ;;  %v3756_v25 = vrot.slane %v389_v33, %v3561_v27 }
  0xf9   : > { %v3740_v36 = vrot.slane %v1214_v32, %v3547_v17  ;;  %v3747_v62 = vrot.slane %v377_v22, %v3561_v27  ;;  %v3750_v24 = vrot.slane %v385_v41, %v3561_v27  ;;  %v3765_v16 = vrot.slane %v1222_v9, %v3547_v17 }
  0xfa   : > { %v3768_v29 = vrot.slane %v393_v23, %v3561_v27  ;;  %v3771_v19 = vrot.slane %v401_v7, %v3561_v27  ;;  %v3774_v11 = vrot.slane %v397_v31, %v3561_v27  ;;  %v3777_v32 = vrot.slane %v1230_v5, %v3547_v17 }
  0xfb   : > { %v3781_v10 = vmul.f32 %v3699_v0, %v3571_v35  ;;  %v3785_v8 = vmul.f32 %v3702_v30, %v3571_v35  ;;  %v3789_v9 = vmul.f32 %v3705_v21, %v3571_v35  ;;  %v3792_v7 = vrot.slane %v405_v13, %v3561_v27 }
  0xfc   : > { %v3796_v22 = vmul.f32 %v3696_v42, %v3569_v34  ;;  %v3799_v17 = vmul.f32 %v449_v3, %v3569_v34  ;;  %v3803_v5 = vmul.f32 %v3737_v2, %v3569_v34  ;;  %v3807_v41 = vmul.f32 %v3708_v18, %v3571_v35 }
  0xfd   : > { %v3811_v33 = vmul.f32 %v3744_v14, %v3569_v34  ;;  %v3815_v27 = vmul.f32 %v3747_v62, %v3569_v34  ;;  %v3819_v23 = vmul.f32 %v3711_v12, %v3571_v35  ;;  %v3823_v31 = vmul.f32 %v3750_v24, %v3569_v34 }
  0xfe   : > { %v3827_v13 = vmul.f32 %v3714_v28, %v3571_v35  ;;  %v3831_v4 = vmul.f32 %v3753_v15, %v3569_v34  ;;  %v3835_v59 = vmul.f32 %v3720_v38, %v3571_v35  ;;  %v3839_v1 = vmul.f32 %v3756_v25, %v3569_v34 }
  0xff   : > { %4999 = vst [vmem:[#allocation40_spill] sm:$0xff] %v3819_v23  ;;  %v3843_v63 = vmul.f32 %v3699_v0, %v3577_v40  ;;  %v3847_v61 = vmul.f32 %v3702_v30, %v3577_v40  ;;  %v3851_v57 = vmul.f32 %v3705_v21, %v3577_v40  ;;  %v3855_v58 = vmul.f32 %v3740_v36, %v3571_v35 }
 0x100   : > { %5000 = vst [vmem:[#allocation41_spill] sm:$0xff] %v3827_v13  ;;  %5001 = vst [vmem:[#allocation42_spill] sm:$0xff] %v3835_v59  ;;  %v3859_v55 = vmul.f32 %v3708_v18, %v3577_v40  ;;  %v3863_v56 = vmul.f32 %v3711_v12, %v3577_v40  ;;  %v3875_v52 = vmul.f32 %v3720_v38, %v3577_v40 }
 0x101   : > { %5002 = vst [vmem:[#allocation43_spill] sm:$0xff] %v3839_v1  ;;  %5003 = vst [vmem:[#allocation44_spill] sm:$0xff] %v3855_v58  ;;  %v3879_v51 = vmul.f32 %v3740_v36, %v3577_v40  ;;  %v3884_v50 = vmul.f32 %v449_v3, %v3574_v37  ;;  %v3888_v48 = vmul.f32 %v3737_v2, %v3574_v37  ;;  %v4958_v1 = vmov 3  }
 0x102   : > { %5004 = vst [vmem:[#allocation45_spill] sm:$0xff] %v3863_v56  ;;  %5006 = vst [vmem:[#allocation47_spill] sm:$0xff] %v3875_v52  ;;  %v3892_v54 = vmul.f32 %v3744_v14, %v3574_v37  ;;  %v3902_v49 = vmul.f32 %v3750_v24, %v3574_v37  ;;  %v3906_v52 = vmul.f32 %v3753_v15, %v3574_v37  ;;  %3086 = vset.pattern.permute.xlu1 %v4958_v1 }
 0x103   : > { %5007 = vst [vmem:[#allocation48_spill] sm:$0xff] %v3879_v51  ;;  %v3898_v51 = vmul.f32 %v3747_v62, %v3574_v37  ;;  %v3910_v58 = vmul.f32 %v3756_v25, %v3574_v37  ;;  %v3914_v56 = vmul.f32 %v3768_v29, %v3569_v34  ;;  %v3918_v59 = vmul.f32 %v3759_v20, %v3571_v35 }
 0x104   : > { %5009 = vst [vmem:[#allocation50_spill] sm:$0xff] %v3902_v49  ;;  %5010 = vst [vmem:[#allocation51_spill] sm:$0xff] %v3906_v52  ;;  %v3922_v13 = vmul.f32 %v3771_v19, %v3569_v34  ;;  %v3926_v49 = vmul.f32 %v3696_v42, %v3581_v43  ;;  %v3929_v52 = vmul.f32 %v449_v3, %v3581_v43  ;;  %2236 = vperm.xlu1 %3086, %v3440_v39  }
 0x105   : > { %5008 = vst [vmem:[#allocation49_spill] sm:$0xff] %v3898_v51  ;;  %5011 = vst [vmem:[#allocation52_spill] sm:$0xff] %v3910_v58  ;;  %v3933_v58 = vmul.f32 %v3737_v2, %v3581_v43  ;;  %v3948_v51 = vmul.f32 %v3744_v14, %v3581_v43  ;;  %v3954_v23 = vmul.f32 %v3737_v2, %v3583_v47 }
 0x106   : > { %5012 = vst [vmem:[#allocation53_spill] sm:$0xff] %v3914_v56  ;;  %5013 = vst [vmem:[#allocation54_spill] sm:$0xff] %v3918_v59  ;;  %v3937_v56 = vmul.f32 %v3762_v26, %v3571_v35  ;;  %v3941_v59 = vmul.f32 %v3696_v42, %v3583_v47  ;;  %v3958_v42 = vmul.f32 %v3744_v14, %v3583_v47 }
 0x107   : > { %5014 = vst [vmem:[#allocation55_spill] sm:$0xff] %v3922_v13  ;;  %v3944_v13 = vmul.f32 %v449_v3, %v3583_v47  ;;  %v3962_v3 = vmul.f32 %v3747_v62, %v3583_v47  ;;  %v3971_v1 = vmul.f32 %v3753_v15, %v3583_v47  ;;  %v3975_v2 = vmul.f32 %v3756_v25, %v3583_v47 }
 0x108   : > { %5015 = vst [vmem:[#allocation56_spill] sm:$0xff] %v3937_v56  ;;  %v3966_v56 = vmul.f32 %v3750_v24, %v3583_v47  ;;  %v3979_v14 = vmul.f32 %v3747_v62, %v3581_v43  ;;  %v3991_v39 = vmul.f32 %v3756_v25, %v3581_v43  ;;  %v3999_v62 = vmul.f32 %v3765_v16, %v3571_v35 }
 0x109   : > { %5016 = vst [vmem:[#allocation57_spill] sm:$0xff] %v3962_v3  ;;  %5018 = vst [vmem:[#allocation59_spill] sm:$0xff] %v3971_v1  ;;  %v3983_v3 = vmul.f32 %v3750_v24, %v3581_v43  ;;  %v3995_v1 = vmul.f32 %v3774_v11, %v3569_v34  ;;  %v4003_v24 = vmul.f32 %v3792_v7, %v3569_v34  ;;  %2240 = vperm.xlu1 %3086, %v3453_v44  }
 0x10a   : > { %5017 = vst [vmem:[#allocation58_spill] sm:$0xff] %v3966_v56  ;;  %v3987_v56 = vmul.f32 %v3753_v15, %v3581_v43  ;;  %5020 = vst [vmem:[#allocation61_spill] sm:$0xff] %v3991_v39  ;;  %v4007_v15 = vmul.f32 %v3777_v32, %v3571_v35  ;;  %v4011_v25 = vmul.f32 %v3768_v29, %v3574_v37 }
 0x10b   : > { %5021 = vst [vmem:[#allocation62_spill] sm:$0xff] %v3995_v1  ;;  %5022 = vst [vmem:[#allocation63_spill] sm:$0xff] %v3999_v62  ;;  %v4015_v39 = vmul.f32 %v3759_v20, %v3577_v40  ;;  %v5027_v1 = vmov 3   ;;  %v4020_v62 = vmul.f32 %v3771_v19, %v3574_v37  ;;  %v4024_v34 = vmul.f32 %v3762_v26, %v3577_v40 }
 0x10c   : > { %5019 = vst [vmem:[#allocation60_spill] sm:$0xff] %v3987_v56  ;;  %5023 = vst [vmem:[#allocation64_spill] sm:$0xff] %v4003_v24  ;;  %3088 = vset.pattern.permute.xlu0 %v5027_v1  ;;  %v4028_v35 = vmul.f32 %v3774_v11, %v3574_v37  ;;  %v4052_v44 = vmul.f32 %v3699_v0, %v3647_v6  ;;  %v4101_v24 = vmul.f32 %v3699_v0, %v3621_v60 }
 0x10d   : > { %5024 = vst [vmem:[#allocation65_spill] sm:$0xff] %v4007_v15  ;;  %5025 = vst [vmem:[#allocation66_spill] sm:$0xff] %v4011_v25  ;;  %2244 = vperm.xlu0 %3088, %v3472_v46   ;;  %v4032_v15 = vpop.permute.xlu1 %1456  ;;  %v4056_v46 = vmul.f32 %v3771_v19, %v3583_v47  ;;  %v5043_v25 = vmov 2   ;;  %v4122_v0 = vmul.f32 %v3705_v21, %v3621_v60 }
 0x10e   : > { %5026 = vst [vmem:[#allocation67_spill] sm:$0xff] %v4015_v39  ;;  %5028 = vst [vmem:[#allocation68_spill] sm:$0xff] %v4020_v62  ;;  %v4036_v39 = vmul.f32 %v3765_v16, %v3577_v40  ;;  %v4040_v62 = vmul.f32 %v3792_v7, %v3574_v37  ;;  %v4060_v37 = vmul.f32 %v3774_v11, %v3583_v47  ;;  %3087 = vset.pattern.permute.xlu1 %v5043_v25 }
 0x10f   : > { %5029 = vst [vmem:[#allocation69_spill] sm:$0xff] %v4024_v34  ;;  %5030 = vst [vmem:[#allocation70_spill] sm:$0xff] %v4028_v35  ;;  %v4044_v34 = vmul.f32 %v3777_v32, %v3577_v40  ;;  %v4048_v35 = vmul.f32 %v3768_v29, %v3583_v47  ;;  %v4064_v40 = vmul.f32 %v3792_v7, %v3583_v47  ;;  %2168 = vperm.xlu1 %3087, %v3466_v45  }
 0x110   : > { %5031 = vst [vmem:[#allocation71_spill] sm:$0xff] %v4036_v39  ;;  %5032 = vst [vmem:[#allocation72_spill] sm:$0xff] %v4040_v62  ;;  %v4072_v39 = vmul.f32 %v3705_v21, %v3647_v6  ;;  %v4084_v47 = vmul.f32 %v3714_v28, %v3647_v6  ;;  %v4096_v62 = vmul.f32 %v3768_v29, %v3581_v43 }
 0x111   : > { %5033 = vst [vmem:[#allocation73_spill] sm:$0xff] %v4044_v34  ;;  %5034 = vst [vmem:[#allocation74_spill] sm:$0xff] %v4048_v35  ;;  %v4068_v34 = vmul.f32 %v3702_v30, %v3647_v6  ;;  %v4076_v35 = vmul.f32 %v3708_v18, %v3647_v6  ;;  %v4118_v29 = vmul.f32 %v3702_v30, %v3621_v60 }
 0x112   : > { %5035 = vst [vmem:[#allocation75_spill] sm:$0xff] %v4056_v46  ;;  %5036 = vst [vmem:[#allocation76_spill] sm:$0xff] %v4060_v37  ;;  %v4080_v46 = vmul.f32 %v3711_v12, %v3647_v6  ;;  %v4092_v37 = vmul.f32 %v3740_v36, %v3647_v6  ;;  %v4126_v25 = vmul.f32 %v3708_v18, %v3621_v60 }
 0x113   : > { %5037 = vst [vmem:[#allocation77_spill] sm:$0xff] %v4064_v40  ;;  %5039 = vst [vmem:[#allocation79_spill] sm:$0xff] %v4084_v47  ;;  %v4088_v40 = vmul.f32 %v3720_v38, %v3647_v6  ;;  %v4105_v47 = vmul.f32 %v3759_v20, %v3647_v6  ;;  %v4140_v30 = vmul.f32 %v3720_v38, %v3621_v60  ;;  %3089 = vset.pattern.permute.xlu1 %v5027_v1 }
 0x114   : > { %5038 = vst [vmem:[#allocation78_spill] sm:$0xff] %v4080_v46  ;;  %5041 = vst [vmem:[#allocation81_spill] sm:$0xff] %v4092_v37  ;;  %v4113_v37 = vmul.f32 %v3762_v26, %v3647_v6  ;;  %v4144_v21 = vmul.f32 %v3740_v36, %v3621_v60  ;;  %v4148_v18 = vmul.f32 %v3759_v20, %v3621_v60  ;;  %2248 = vperm.xlu1 %3089, %v3466_v45  }
 0x115   : > { %5040 = vst [vmem:[#allocation80_spill] sm:$0xff] %v4088_v40  ;;  %5042 = vst [vmem:[#allocation82_spill] sm:$0xff] %v4096_v62  ;;  %v4109_v40 = vmul.f32 %v3771_v19, %v3581_v43  ;;  %v4130_v19 = vmul.f32 %v3711_v12, %v3621_v60  ;;  %v4157_v38 = vmul.f32 %v3765_v16, %v3621_v60 }
 0x116   : > { %5044 = vst [vmem:[#allocation83_spill] sm:$0xff] %v4105_v47  ;;  %5046 = vst [vmem:[#allocation85_spill] sm:$0xff] %v4113_v37  ;;  %v4132_v47 = vpop.permute.xlu1 %1536  ;;  %v4161_v36 = vmul.f32 %v3777_v32, %v3621_v60 }
 0x117   : > { %5045 = vst [vmem:[#allocation84_spill] sm:$0xff] %v4109_v40  ;;  %v4136_v40 = vmul.f32 %v3714_v28, %v3621_v60  ;;  %5047 = vst [vmem:[#allocation86_spill] sm:$0xff] %v4148_v18  ;;  %v4153_v28 = vmul.f32 %v3762_v26, %v3621_v60  ;;  %v4171_v26 = vmul.f32 %v3765_v16, %v3647_v6 }
 0x118   : > { %5048 = vst [vmem:[#allocation87_spill] sm:$0xff] %v4157_v38 }
 0x131   : > { %v777_v37 = vpop.f32.mrb[0].mxu0  ;;  %v830_v62 = vpop.f32.mrb[0].mxu1 }
 0x132   : > { %v778_v12 = vadd.f32 %v777_v37, %v3796_v22  ;;  %v779_v46 = vpop.f32.mrb[1].mxu0  ;;  %v831_v56 = vadd.f32 %v830_v62, %v3799_v17  ;;  %v832_v18 = vpop.f32.mrb[1].mxu1  ;;  %v4167_v37 = vmul.f32 %v3774_v11, %v3581_v43 }
 0x133   : > { %v780_v20 = vadd.f32 %v779_v46, %v3803_v5  ;;  %v781_v22 = vpop.f32.mrb[2].mxu0  ;;  %v833_v60 = vadd.f32 %v832_v18, %v3811_v33  ;;  %v834_v62 = vpop.f32.mrb[2].mxu1  ;;  %v4179_v46 = vmul.f32 %v3792_v7, %v3581_v43 }
 0x134   : > { %v1391_v38 = vadd.f32 %v3781_v10, %v778_v12  ;;  %v782_v17 = vadd.f32 %v781_v22, %v3871_v53  ;;  %v783_v5 = vpop.f32.mrb[3].mxu0  ;;  %v1393_v11 = vadd.f32 %v3785_v8, %v831_v56  ;;  %v835_v1 = vadd.f32 %v834_v62, %v3884_v50  ;;  %v836_v12 = vpop.f32.mrb[3].mxu1 }
 0x135   : > { %v1392_v16 = vadd.f32 %v3789_v9, %v780_v20  ;;  %v784_v10 = vadd.f32 %v783_v5, %v3888_v48  ;;  %v1394_v53 = vadd.f32 %v3807_v41, %v833_v60  ;;  %v837_v43 = vadd.f32 %v836_v12, %v3892_v54  ;;  %v4194_v50 = vpop.permute.xlu0 %1460 }
 0x136   : > { %v1471_v33 = vmul.f32 %v4032_v15, %v1391_v38  ;;  %v1407_v18 = vadd.f32 %v3843_v63, %v782_v17  ;;  %v1473_v7 = vmul.f32 %v4032_v15, %v1393_v11  ;;  %v1409_v56 = vadd.f32 %v3847_v61, %v835_v1  ;;  %v4208_v38 = vpop.permute.xlu1 %1540 }
 0x137   : > { %v1472_v45 = vmul.f32 %v4032_v15, %v1392_v16  ;;  %v1408_v8 = vadd.f32 %v3851_v57, %v784_v10  ;;  %v1474_v9 = vmul.f32 %v4032_v15, %v1394_v53  ;;  %v1410_v41 = vadd.f32 %v3859_v55, %v837_v43 }
 0x138   : > { %v4197_v48 = vadd.f32 %v4132_v47, %v1471_v33  ;;  %v4203_v54 = vmul.f32 %v3777_v32, %v3647_v6  ;;  %v4206_v63 = vadd.f32 %v4132_v47, %v1473_v7  ;;  %v1487_v22 = vmul.f32 %v4194_v50, %v1407_v18 }
 0x139   : > { %v787_v61 = vpop.f32.mrb[4].mxu0  ;;  %v1488_v57 = vmul.f32 %v4194_v50, %v1408_v8  ;;  %v1552_v20 = vadd.f32 %v4132_v47, %v1472_v45  ;;  %v840_v17 = vpop.f32.mrb[4].mxu1  ;;  %v1490_v6 = vmul.f32 %v4194_v50, %v1410_v41  ;;  %v1489_v32 = vmul.f32 %v4194_v50, %v1409_v56 }
 0x13a   : > { %v1615_v60 = vmax.f32 %v4197_v48, 0.0  ;;  %v788_v55 = vadd.f32 %v787_v61, %v3941_v59  ;;  %v789_v62 = vpop.f32.mrb[5].mxu0  ;;  %v1617_v5 = vmax.f32 %v4206_v63, 0.0  ;;  %v841_v11 = vadd.f32 %v840_v17, %v3944_v13  ;;  %v842_v1 = vpop.f32.mrb[5].mxu1  ;;  %v5057_v48 = vld [vmem:[#allocation51_spill] sm:$0xff] }
 0x13b   : > { %v790_v16 = vadd.f32 %v789_v62, %v3954_v23  ;;  %v791_v10 = vpop.f32.mrb[6].mxu0  ;;  %v1554_v12 = vadd.f32 %v4132_v47, %v1474_v9  ;;  %v843_v59 = vadd.f32 %v842_v1, %v3958_v42  ;;  %v844_v18 = vpop.f32.mrb[6].mxu1  ;;  %v1568_v7 = vadd.f32 %v4208_v38, %v1488_v57 }
 0x13c   : > { %v1423_v33 = vadd.f32 %v4101_v24, %v788_v55  ;;  %v792_v53 = vadd.f32 %v791_v10, %v3926_v49  ;;  %v793_v43 = vpop.f32.mrb[7].mxu0  ;;  %v4225_v45 = vpop.permute.xlu0 %1464  ;;  %v1425_v13 = vadd.f32 %v4118_v29, %v841_v11  ;;  %v845_v56 = vadd.f32 %v844_v18, %v3929_v52 }
 0x13d   : > { %v1424_v23 = vadd.f32 %v4122_v0, %v790_v16  ;;  %v794_v8 = vadd.f32 %v793_v43, %v3933_v58  ;;  %v846_v9 = vpop.f32.mrb[7].mxu1  ;;  %v1426_v49 = vadd.f32 %v4126_v25, %v843_v59  ;;  %v1616_v41 = vmax.f32 %v1552_v20, 0.0  ;;  %v4250_v25 = vpop.permute.xlu1 %1468  ;;  %v5049_v43 = vld [vmem:[#allocation40_spill] sm:$0xff] }
 0x13e   : > { %v4232_v24 = vmul.f32 %v4225_v45, %v1423_v33  ;;  %v847_v42 = vadd.f32 %v846_v9, %v3948_v51  ;;  %v4237_v63 = vmul.f32 %v4225_v45, %v1425_v13  ;;  %v4241_v0 = vadd.f32 %v4052_v44, %v792_v53  ;;  %v5051_v13 = vld [vmem:[#allocation49_spill] sm:$0xff] }
 0x13f   : > { %v1504_v29 = vmul.f32 %v4225_v45, %v1424_v23  ;;  %v1440_v52 = vadd.f32 %v4072_v39, %v794_v8  ;;  %v4245_v58 = vmul.f32 %v4225_v45, %v1426_v49  ;;  %v4248_v61 = vadd.f32 %v4068_v34, %v845_v56  ;;  %v5052_v9 = vld [vmem:[#allocation41_spill] sm:$0xff] }
 0x140   : > { %v1632_v51 = vmax.f32 %v1568_v7, 0.0  ;;  %v1570_v57 = vadd.f32 %v4208_v38, %v1490_v6  ;;  %v4254_v20 = vadd.f32 %v4076_v35, %v847_v42  ;;  %v4256_v55 = vpop.permute.xlu0 %1544  ;;  %v1618_v17 = vmax.f32 %v1554_v12, 0.0  ;;  %v5050_v7 = vld [vmem:[#allocation43_spill] sm:$0xff]  ;;  %v5053_v42 = vld [vmem:[#allocation42_spill] sm:$0xff] }
 0x141   : > { %v883_v44 = vpop.f32.mrb[8].mxu0  ;;  %v1567_v39 = vadd.f32 %v4208_v38, %v1487_v22  ;;  %v1569_v62 = vadd.f32 %v4208_v38, %v1489_v32  ;;  %v936_v34 = vpop.f32.mrb[8].mxu1  ;;  %v1520_v33 = vmul.f32 %v4250_v25, %v1440_v52 }
 0x142   : > { %v884_v11 = vadd.f32 %v883_v44, %v3815_v27  ;;  %v1684_v16 = vpack.c.bf16 %v1632_v51, %v1616_v41  ;;  %v1634_v1 = vmax.f32 %v1570_v57, 0.0  ;;  %v885_v10 = vpop.f32.mrb[9].mxu0  ;;  %v937_v6 = vadd.f32 %v936_v34, %v3823_v31  ;;  %v938_v59 = vpop.f32.mrb[9].mxu1  ;;  %v5054_v44 = vld [vmem:[#allocation45_spill] sm:$0xff] }
 0x143   : > { %v886_v35 = vadd.f32 %v885_v10, %v3831_v4  ;;  %v1631_v53 = vmax.f32 %v1567_v39, 0.0  ;;  %v1633_v18 = vmax.f32 %v1569_v62, 0.0  ;;  %v887_v12 = vpop.f32.mrb[10].mxu0  ;;  %v939_v27 = vadd.f32 %v938_v59, %v5050_v7  ;;  %v940_v56 = vpop.f32.mrb[10].mxu1  ;;  %v5055_v39 = vld [vmem:[#allocation50_spill] sm:$0xff] }
 0x144   : > { %v1395_v22 = vadd.f32 %v5049_v43, %v884_v11  ;;  %1731 = vmatprep.subr.bf16.mxu0 %v1684_v16  ;;  %v1686_v32 = vpack.c.bf16 %v1634_v1, %v1618_v17  ;;  %v888_v23 = vadd.f32 %v887_v12, %v5051_v13  ;;  %v889_v8 = vpop.f32.mrb[11].mxu0  ;;  %v1397_v49 = vadd.f32 %v5052_v9, %v937_v6  ;;  %v942_v52 = vpop.f32.mrb[11].mxu1  ;;  %v5056_v16 = vld [vmem:[#allocation44_spill] sm:$0xff]  ;;  %v5061_v13 = vld [vmem:[#allocation57_spill] sm:$0xff] }
 0x145   : > { %v1396_v31 = vadd.f32 %v5053_v42, %v886_v35  ;;  %v1683_v4 = vpack.c.bf16 %v1631_v53, %v1615_v60  ;;  %v1685_v41 = vpack.c.bf16 %v1633_v18, %v1617_v5  ;;  %v4272_v57 = vpop.permute.xlu1 %1548  ;;  %v941_v62 = vadd.f32 %v940_v56, %v5055_v39  ;;  %v5058_v35 = vld [vmem:[#allocation46_spill] sm:$0xff]  ;;  %v5059_v53 = vld [vmem:[#allocation47_spill] sm:$0xff]  ;;  %v5060_v12 = vld [vmem:[#allocation52_spill] sm:$0xff] }
 0x146   : > { %v1475_v51 = vmul.f32 %v4032_v15, %v1395_v22  ;;  %1784 = vmatprep.subr.bf16.mxu1 %v1686_v32  ;;  %v1411_v17 = vadd.f32 %v5054_v44, %v888_v23  ;;  %v1584_v11 = vadd.f32 %v4256_v55, %v1504_v29  ;;  %v1477_v34 = vmul.f32 %v4032_v15, %v1397_v49 }
 0x147   : > { %v1398_v1 = vadd.f32 %v5056_v16, %v939_v27  ;;  %1732 = vmatpush1.bf16.msra.mxu0 %v1683_v4  ;;  %1785 = vmatpush1.bf16.msra.mxu1 %v1685_v41  ;;  %v890_v60 = vadd.f32 %v889_v8, %v5057_v48  ;;  %v4284_v10 = vmul.f32 %v4032_v15, %v1396_v31  ;;  %v5062_v31 = vld [vmem:[#allocation48_spill] sm:$0xff]  ;;  %v5063_v41 = vld [vmem:[#allocation58_spill] sm:$0xff] }
 0x148   : > { %v4281_v5 = vadd.f32 %v4132_v47, %v1475_v51  ;;  %v1491_v6 = vmul.f32 %v4194_v50, %v1411_v17  ;;  %v1413_v59 = vadd.f32 %v5058_v35, %v941_v62  ;;  %v4289_v29 = vadd.f32 %v4132_v47, %v1477_v34 }
 0x149   : > { %v1412_v18 = vadd.f32 %v5059_v53, %v890_v60  ;;  %v943_v43 = vadd.f32 %v942_v52, %v5060_v12  ;;  %v893_v22 = vpop.f32.mrb[12].mxu0  ;;  %v1600_v32 = vadd.f32 %v4272_v57, %v1520_v33  ;;  %v946_v56 = vpop.f32.mrb[12].mxu1  ;;  %v1648_v8 = vmax.f32 %v1584_v11, 0.0  ;;  %v5064_v53 = vld [vmem:[#allocation59_spill] sm:$0xff] }
 0x14a   : > { %v4295_v7 = vadd.f32 %v4208_v38, %v1491_v6  ;;  %v1493_v27 = vmul.f32 %v4194_v50, %v1413_v59  ;;  %v894_v23 = vadd.f32 %v893_v22, %v5061_v13  ;;  %v895_v9 = vpop.f32.mrb[13].mxu0  ;;  %v1619_v49 = vmax.f32 %v4281_v5, 0.0  ;;  %v948_v33 = vpop.f32.mrb[13].mxu1  ;;  %v4445_v5 = vld [vmem:[%s4951_s2 + $0x18] sm:$0xff]  }
 0x14b   : > { %v4301_v42 = vmul.f32 %v4032_v15, %v1398_v1  ;;  %v1414_v4 = vadd.f32 %v5062_v31, %v943_v43  ;;  %v947_v52 = vadd.f32 %v946_v56, %v5063_v41  ;;  %v897_v51 = vpop.f32.mrb[14].mxu0  ;;  %v1621_v44 = vmax.f32 %v4289_v29, 0.0  ;;  %v950_v11 = vpop.f32.mrb[14].mxu1  ;;  %v5082_v29 = vld [vmem:[#allocation70_spill] sm:$0xff] }
 0x14c   : > { %v4307_v17 = vmul.f32 %v4194_v50, %v1412_v18  ;;  %v1427_v39 = vadd.f32 %v4130_v19, %v894_v23  ;;  %v1664_v62 = vmax.f32 %v1600_v32, 0.0  ;;  %v899_v34 = vpop.f32.mrb[15].mxu0  ;;  %v4311_v16 = vadd.f32 %v4208_v38, %v1493_v27  ;;  %v952_v6 = vpop.f32.mrb[15].mxu1 }
 0x14d   : > { %v1429_v1 = vadd.f32 %v4136_v40, %v947_v52  ;;  %v1522_v48 = vmul.f32 %v4250_v25, %v4254_v20  ;;  %v1586_v60 = vadd.f32 %v4256_v55, %v4245_v58  ;;  %v1635_v35 = vmax.f32 %v4295_v7, 0.0 }
 0x14e   : > { %v1507_v59 = vmul.f32 %v4225_v45, %v1427_v39  ;;  %v1700_v19 = vpack.c.bf16 %v1664_v62, %v1648_v8  ;;  %v896_v18 = vadd.f32 %v895_v9, %v5064_v53  ;;  %v4322_v12 = vmul.f32 %v4194_v50, %v1414_v4 }
 0x14f   : > { %v1509_v43 = vmul.f32 %v4225_v45, %v1429_v1  ;;  %v1602_v40 = vadd.f32 %v4272_v57, %v1522_v48  ;;  %v949_v20 = vadd.f32 %v948_v33, %v3975_v2  ;;  %v1519_v32 = vmul.f32 %v4250_v25, %v4241_v0 }
 0x150   : > { %v4328_v22 = vadd.f32 %v4256_v55, %v1507_v59  ;;  %1733 = vmatprep.subr.bf16.mxu0 %v1700_v19  ;;  %v1428_v58 = vadd.f32 %v4140_v30, %v896_v18  ;;  %v1583_v27 = vadd.f32 %v4256_v55, %v4232_v24  ;;  %v1637_v13 = vmax.f32 %v4311_v16, 0.0  ;;  %v5065_v18 = vld [vmem:[#allocation60_spill] sm:$0xff] }
 0x151   : > { %v1650_v23 = vmax.f32 %v1586_v60, 0.0  ;;  %v1666_v56 = vmax.f32 %v1602_v40, 0.0  ;;  %v1521_v8 = vmul.f32 %v4250_v25, %v4248_v61  ;;  %v989_v2 = vpop.f32.mrb[16].mxu0  ;;  %v4340_v31 = vadd.f32 %v4256_v55, %v1509_v43  ;;  %v5066_v40 = vld [vmem:[#allocation61_spill] sm:$0xff] }
 0x152   : > { %v1430_v30 = vadd.f32 %v4144_v21, %v949_v20  ;;  %v1599_v0 = vadd.f32 %v4272_v57, %v1519_v32  ;;  %v1042_v4 = vpop.f32.mrb[16].mxu1  ;;  %v991_v41 = vpop.f32.mrb[17].mxu0  ;;  %v4345_v52 = vmul.f32 %v4225_v45, %v1428_v58  ;;  %v1647_v33 = vmax.f32 %v1583_v27, 0.0  ;;  %v5067_v20 = vld [vmem:[#allocation53_spill] sm:$0xff] }
 0x153   : > { %v1702_v24 = vpack.c.bf16 %v1666_v56, %v1650_v23  ;;  %v1585_v61 = vadd.f32 %v4256_v55, %v4237_v63  ;;  %v1044_v39 = vpop.f32.mrb[17].mxu1  ;;  %v4349_v62 = vpop.f32.mrb[18].mxu0  ;;  %v1601_v48 = vadd.f32 %v4272_v57, %v1521_v8  ;;  %v898_v21 = vadd.f32 %v897_v51, %v3979_v14  ;;  %v5068_v56 = vld [vmem:[#allocation78_spill] sm:$0xff]  ;;  %v5069_v51 = vld [vmem:[#allocation79_spill] sm:$0xff] }
 0x154   : > { %v1663_v1 = vmax.f32 %v1599_v0, 0.0  ;;  %v951_v60 = vadd.f32 %v950_v11, %v3983_v3  ;;  %v4354_v59 = vpop.f32.mrb[18].mxu1  ;;  %v4356_v19 = vpop.f32.mrb[19].mxu0  ;;  %v900_v43 = vadd.f32 %v899_v34, %v5065_v18  ;;  %v953_v63 = vadd.f32 %v952_v6, %v5066_v40  ;;  %v5070_v11 = vld [vmem:[#allocation80_spill] sm:$0xff]  ;;  %v5071_v0 = vld [vmem:[#allocation81_spill] sm:$0xff]  ;;  %v4370_v34 = vld [vmem:[%s4951_s2 + $0x10] sm:$0xff]  }
 0x155   : > { %1786 = vmatprep.subr.bf16.mxu1 %v1702_v24  ;;  %v1649_v53 = vmax.f32 %v1585_v61, 0.0  ;;  %v990_v58 = vadd.f32 %v989_v2, %v5067_v20  ;;  %v4361_v32 = vpop.f32.mrb[19].mxu1  ;;  %v1665_v23 = vmax.f32 %v1601_v48, 0.0  ;;  %v1443_v14 = vadd.f32 %v5068_v56, %v898_v21  ;;  %v5072_v6 = vld [vmem:[#allocation54_spill] sm:$0xff]  ;;  %v5073_v2 = vld [vmem:[#allocation55_spill] sm:$0xff]  ;;  %v5074_v40 = vld [vmem:[#allocation56_spill] sm:$0xff] }
 0x156   : > { %v1699_v27 = vpack.c.bf16 %v1663_v1, %v1647_v33  ;;  %v1445_v3 = vadd.f32 %v5069_v51, %v951_v60  ;;  %v1444_v8 = vadd.f32 %v5070_v11, %v900_v43  ;;  %v1446_v9 = vadd.f32 %v5071_v0, %v953_v63  ;;  %v5075_v0 = vld [vmem:[#allocation62_spill] sm:$0xff] }
 0x157   : > { %v1399_v24 = vadd.f32 %v5072_v6, %v990_v58  ;;  %v1043_v61 = vadd.f32 %v1042_v4, %v5073_v2  ;;  %v1701_v33 = vpack.c.bf16 %v1665_v23, %v1649_v53  ;;  %v1523_v1 = vmul.f32 %v4250_v25, %v1443_v14 }
 0x158   : > { %1734 = vmatpush1.bf16.msra.mxu0 %v1699_v27  ;;  %v1525_v48 = vmul.f32 %v4250_v25, %v1445_v3  ;;  %v1556_v21 = vadd.f32 %v4132_v47, %v4284_v10  ;;  %v1653_v60 = vmax.f32 %v4340_v31, 0.0  ;;  %v4380_v18 = vmul.f32 %v4225_v45, %v1430_v30 }
 0x159   : > { %v1479_v43 = vmul.f32 %v4032_v15, %v1399_v24  ;;  %v1401_v63 = vadd.f32 %v5074_v40, %v1043_v61  ;;  %v999_v20 = vpop.f32.mrb[20].mxu0  ;;  %1787 = vmatpush1.bf16.msra.mxu1 %v1701_v33  ;;  %v4385_v4 = vadd.f32 %v4272_v57, %v1523_v1  ;;  %v4388_v53 = vmul.f32 %v4250_v25, %v1444_v8  ;;  %v5078_v40 = vld [vmem:[#allocation64_spill] sm:$0xff] }
 0x15a   : > { %v4391_v58 = vmul.f32 %v4250_v25, %v1446_v9  ;;  %v1572_v10 = vadd.f32 %v4208_v38, %v4307_v17  ;;  %v1052_v30 = vpop.f32.mrb[20].mxu1  ;;  %v4395_v27 = vpop.f32.mrb[21].mxu0  ;;  %v4398_v23 = vadd.f32 %v4272_v57, %v1525_v48  ;;  %v1558_v14 = vadd.f32 %v4132_v47, %v4301_v42 }
 0x15b   : > { %2975 = vmatmul.mubr.msk.bf16.vlgmr.msra.gmra.mrb[32].mxu0 %vm736_vm0, %v4370_v34  ;;  %v1481_v56 = vmul.f32 %v4032_v15, %v1401_v63  ;;  %v1574_v9 = vadd.f32 %v4208_v38, %v4322_v12  ;;  %v4407_v51 = vpop.f32.mrb[21].mxu1  ;;  %v4409_v17 = vpop.f32.mrb[22].mxu0  ;;  %v4412_v3 = vadd.f32 %v4132_v47, %v1479_v43  ;;  %v1620_v11 = vmax.f32 %v1556_v21, 0.0 }
 0x15c   : > { %v1636_v8 = vmax.f32 %v1572_v10, 0.0  ;;  %v992_v6 = vadd.f32 %v991_v41, %v5075_v0  ;;  %v5076_v24 = vmov 0   ;;  %v4416_v2 = vpop.f32.mrb[22].mxu1  ;;  %v4418_v61 = vpop.f32.mrb[23].mxu0  ;;  %v1667_v42 = vmax.f32 %v4385_v4, 0.0  ;;  %2977 = vmatmul.mubr.msk.bf16.vlgmr.msra.gmra.mrb[32].mxu1 %vm736_vm0, %v4370_v34  ;;  %v5077_v41 = vld [vmem:[#allocation63_spill] sm:$0xff] }
 0x15d   : > { %1773 = vmatprep.mubr.bf16.mxu0 %v5076_v24  ;;  %v4424_v12 = vadd.f32 %v4132_v47, %v1481_v56  ;;  %v1622_v33 = vmax.f32 %v1558_v14, 0.0  ;;  %v1638_v1 = vmax.f32 %v1574_v9, 0.0  ;;  %v4426_v48 = vpop.f32.mrb[23].mxu1  ;;  %v1045_v63 = vadd.f32 %v1044_v39, %v5078_v40  ;;  %1826 = vmatprep.mubr.bf16.mxu1 %v5076_v24  ;;  %v5079_v9 = vld [vmem:[#allocation66_spill] sm:$0xff]  ;;  %v5081_v39 = vld [vmem:[#allocation68_spill] sm:$0xff] }
 0x15e   : > { %v1688_v21 = vpack.c.bf16 %v1636_v8, %v1620_v11  ;;  %v1400_v43 = vadd.f32 %v5077_v41, %v992_v6  ;;  %v1687_v10 = vpack.c.bf16 %v1635_v35, %v1619_v49  ;;  %v1689_v14 = vpack.c.bf16 %v1637_v13, %v1621_v44  ;;  %v5080_v49 = vld [vmem:[#allocation65_spill] sm:$0xff]  ;;  %v5083_v13 = vld [vmem:[#allocation67_spill] sm:$0xff]  ;;  %v5084_v6 = vld [vmem:[#allocation72_spill] sm:$0xff] }
 0x15f   : > { %v1690_v56 = vpack.c.bf16 %v1638_v1, %v1622_v33  ;;  %v994_v11 = vadd.f32 %v4349_v62, %v5079_v9  ;;  %v1402_v35 = vadd.f32 %v5080_v49, %v1045_v63  ;;  %v1047_v8 = vadd.f32 %v4354_v59, %v5081_v39  ;;  %v5085_v1 = vld [vmem:[#allocation74_spill] sm:$0xff]  ;;  %v5086_v59 = vld [vmem:[#allocation69_spill] sm:$0xff]  ;;  %v5088_v49 = vld [vmem:[#allocation75_spill] sm:$0xff] }
 0x160   : > { %1837 = vmatprep.subr.bf16.mxu0 %v1688_v21  ;;  %v996_v16 = vadd.f32 %v4356_v19, %v5082_v29  ;;  %v1049_v33 = vadd.f32 %v4361_v32, %v5084_v6  ;;  %v1000_v41 = vadd.f32 %v999_v20, %v5085_v1  ;;  %v4461_v40 = vmul.f32 %v4032_v15, %v1400_v43  ;;  %v5087_v19 = vld [vmem:[#allocation71_spill] sm:$0xff]  ;;  %v5089_v39 = vld [vmem:[#allocation73_spill] sm:$0xff]  ;;  %v5090_v43 = vld [vmem:[#allocation86_spill] sm:$0xff] }
 0x161   : > { %1890 = vmatprep.subr.bf16.mxu1 %v1690_v56  ;;  %1838 = vmatpush1.bf16.msra.mxu0 %v1687_v10  ;;  %v1415_v62 = vadd.f32 %v5083_v13, %v994_v11  ;;  %v4458_v21 = vpop.f32.mrb[24].mxu0  ;;  %v1417_v63 = vadd.f32 %v5086_v59, %v1047_v8  ;;  %v1053_v56 = vadd.f32 %v1052_v30, %v5088_v49 }
 0x162   : > { %1891 = vmatpush1.bf16.msra.mxu1 %v1689_v14  ;;  %v1416_v9 = vadd.f32 %v5087_v19, %v996_v16  ;;  %v4466_v10 = vpop.f32.mrb[24].mxu1  ;;  %v4468_v11 = vpop.f32.mrb[25].mxu0  ;;  %v1418_v20 = vadd.f32 %v5089_v39, %v1049_v33  ;;  %v1431_v29 = vadd.f32 %v5090_v43, %v1000_v41  ;;  %v1588_v14 = vadd.f32 %v4256_v55, %v4345_v52  ;;  %v5091_v39 = vld [vmem:[#allocation76_spill] sm:$0xff] }
 0x163   : > { %v1495_v32 = vmul.f32 %v4194_v50, %v1415_v62  ;;  %2976 = vmatmul.mubr.msk.bf16.gmra.mrb[36].mxu0 %vm736_vm0, %v4445_v5  ;;  %v4477_v8 = vpop.f32.mrb[25].mxu1  ;;  %v4479_v16 = vpop.f32.mrb[26].mxu0  ;;  %v4482_v30 = vmul.f32 %v4032_v15, %v1402_v35  ;;  %v1497_v13 = vmul.f32 %v4194_v50, %v1417_v63  ;;  %v1433_v62 = vadd.f32 %v4153_v28, %v1053_v56 }
 0x164   : > { %v1604_v6 = vadd.f32 %v4272_v57, %v4388_v53  ;;  %1869 = vmatprep.mubr.bf16.mxu0 %v5076_v24  ;;  %v4489_v33 = vpop.f32.mrb[26].mxu1  ;;  %v4491_v1 = vpop.f32.mrb[27].mxu0  ;;  %v1496_v41 = vmul.f32 %v4194_v50, %v1416_v9  ;;  %2978 = vmatmul.mubr.msk.bf16.gmra.mrb[36].mxu1 %vm736_vm0, %v4445_v5  ;;  %v1511_v35 = vmul.f32 %v4225_v45, %v1431_v29  ;;  %v1652_v28 = vmax.f32 %v1588_v14, 0.0 }
 0x165   : > { %v4494_v52 = vadd.f32 %v4208_v38, %v1495_v32  ;;  %v4500_v59 = vpop.f32.mrb[27].mxu1  ;;  %v4503_v53 = vadd.f32 %v4208_v38, %v1497_v13  ;;  %v1513_v63 = vmul.f32 %v4225_v45, %v1433_v62  ;;  %v1590_v49 = vadd.f32 %v4256_v55, %v4380_v18  ;;  %1922 = vmatprep.mubr.bf16.mxu1 %v5076_v24 }
 0x166   : > { %v1668_v19 = vmax.f32 %v1604_v6, 0.0  ;;  %v1498_v9 = vmul.f32 %v4194_v50, %v1418_v20  ;;  %v4511_v56 = vadd.f32 %v4256_v55, %v1511_v35  ;;  %v1606_v32 = vadd.f32 %v4272_v57, %v4391_v58  ;;  %v5092_v20 = vld [vmem:[#allocation87_spill] sm:$0xff]  ;;  %v5093_v35 = vld [vmem:[#allocation77_spill] sm:$0xff] }
 0x167   : > { %v1002_v43 = vadd.f32 %v4395_v27, %v5091_v39  ;;  %v1639_v29 = vmax.f32 %v4494_v52, 0.0  ;;  %v1641_v14 = vmax.f32 %v4503_v53, 0.0  ;;  %v4520_v13 = vadd.f32 %v4256_v55, %v1513_v63 }
 0x168   : > { %v1704_v18 = vpack.c.bf16 %v1668_v19, %v1652_v28  ;;  %v1654_v62 = vmax.f32 %v1590_v49, 0.0  ;;  %v1670_v6 = vmax.f32 %v1606_v32, 0.0  ;;  %v1055_v7 = vadd.f32 %v4407_v51, %v5093_v35  ;;  %v5096_v19 = vld [vmem:[#allocation82_spill] sm:$0xff] }
 0x169   : > { %v1432_v44 = vadd.f32 %v5092_v20, %v1002_v43  ;;  %v4525_v0 = vpop.f32.mrb[28].mxu0  ;;  %v1655_v58 = vmax.f32 %v4511_v56, 0.0  ;;  %v5094_v27 = vmax.f32 %v4328_v22, 0.0  ;;  %v5095_v28 = vmax.f32 %v4398_v23, 0.0  ;;  %v5097_v20 = vld [vmem:[#allocation84_spill] sm:$0xff] }
 0x16a   : > { %1839 = vmatprep.subr.bf16.mxu0 %v1704_v18  ;;  %v1004_v49 = vadd.f32 %v4409_v17, %v5096_v19  ;;  %v4538_v32 = vpop.f32.mrb[28].mxu1  ;;  %v4540_v51 = vpop.f32.mrb[29].mxu0  ;;  %v1657_v43 = vmax.f32 %v4520_v13, 0.0  ;;  %v1706_v18 = vpack.c.bf16 %v1670_v6, %v1654_v62  ;;  %v1434_v22 = vadd.f32 %v4161_v36, %v1055_v7  ;;  %v5100_v6 = vld [vmem:[#allocation85_spill] sm:$0xff]  ;;  %v5128_v56 = vld [vmem:[#allocation36_spill] sm:$0xff] }
 0x16b   : > { %v1703_v39 = vpack.c.bf16 %v1667_v42, %v5094_v27  ;;  %v1705_v63 = vpack.c.bf16 %v5095_v28, %v1653_v60  ;;  %v1057_v4 = vadd.f32 %v4416_v2, %v5097_v20  ;;  %v4546_v42 = vpop.f32.mrb[29].mxu1  ;;  %v4548_v31 = vpop.f32.mrb[30].mxu0  ;;  %v5098_v60 = vld [vmem:[#allocation83_spill] sm:$0xff]  ;;  %v1006_v17 = vadd.f32 %v4418_v61, %v4167_v37  ;;  %v5099_v27 = vld [vmem:[#allocation8_spill] sm:$0xff]  ;;  %v5101_v28 = vld [vmem:[#allocation10_spill] sm:$0xff] }
 0x16c   : > { %v1447_v23 = vadd.f32 %v5098_v60, %v1004_v49  ;;  %v1059_v35 = vadd.f32 %v4426_v48, %v4179_v46  ;;  %v1096_v62 = vadd.f32 %v4458_v21, %v5099_v27  ;;  %v4557_v36 = vpop.f32.mrb[30].mxu1  ;;  %v4559_v7 = vpop.f32.mrb[31].mxu0  ;;  %1892 = vmatprep.subr.bf16.mxu1 %v1706_v18  ;;  %v4562_v2 = vmul.f32 %v4225_v45, %v1432_v44  ;;  %v5102_v49 = vld [vmem:[#allocation9_spill] sm:$0xff] }
 0x16d   : > { %1840 = vmatpush1.bf16.msra.mxu0 %v1703_v39  ;;  %v1449_v39 = vadd.f32 %v5100_v6, %v1057_v4  ;;  %v1149_v19 = vadd.f32 %v4466_v10, %v5101_v28  ;;  %v1560_v37 = vadd.f32 %v4132_v47, %v4461_v40  ;;  %v4569_v46 = vpop.f32.mrb[31].mxu1  ;;  %1893 = vmatpush1.bf16.msra.mxu1 %v1705_v63  ;;  %v5103_v40 = vld [vmem:[#allocation11_spill] sm:$0xff]  ;;  %v5104_v6 = vld [vmem:[#allocation12_spill] sm:$0xff] }
 0x16e   : > { %v1527_v61 = vmul.f32 %v4250_v25, %v1447_v23  ;;  %v1448_v48 = vadd.f32 %v4171_v26, %v1006_v17  ;;  %v1450_v21 = vadd.f32 %v4203_v54, %v1059_v35  ;;  %v1403_v44 = vadd.f32 %v5102_v49, %v1096_v62 }
 0x16f   : > { %v4576_v18 = vmul.f32 %v4225_v45, %v1434_v22  ;;  %v1529_v20 = vmul.f32 %v4250_v25, %v1449_v39  ;;  %v1405_v10 = vadd.f32 %v5103_v40, %v1149_v19  ;;  %v1576_v63 = vadd.f32 %v4208_v38, %v1496_v41 }
 0x170   : > { %2979 = vmatmul.mubr.msk.bf16.vlgmr.msra.gmra.mrb[40].mxu0 %vm736_vm0, %v4370_v34  ;;  %v4584_v4 = vadd.f32 %v4272_v57, %v1527_v61  ;;  %v1528_v26 = vmul.f32 %v4250_v25, %v1448_v48  ;;  %v1483_v54 = vmul.f32 %v4032_v15, %v1403_v44  ;;  %v1624_v60 = vmax.f32 %v1560_v37, 0.0  ;;  %2981 = vmatmul.mubr.msk.bf16.vlgmr.msra.gmra.mrb[40].mxu1 %vm736_vm0, %v4370_v34  ;;  %v5106_v44 = vld [vmem:[#allocation14_spill] sm:$0xff] }
 0x171   : > { %1879 = vmatprep.mubr.bf16.mxu0 %v5076_v24  ;;  %v4590_v22 = vadd.f32 %v4272_v57, %v1529_v20  ;;  %v1485_v23 = vmul.f32 %v4032_v15, %v1405_v10  ;;  %v1640_v17 = vmax.f32 %v1576_v63, 0.0  ;;  %v1562_v41 = vadd.f32 %v4132_v47, %v4482_v30  ;;  %1932 = vmatprep.mubr.bf16.mxu1 %v5076_v24 }
 0x172   : > { %v1530_v35 = vmul.f32 %v4250_v25, %v1450_v21  ;;  %v4599_v27 = vadd.f32 %v4132_v47, %v1483_v54  ;;  %v1578_v62 = vadd.f32 %v4208_v38, %v1498_v9  ;;  %v1098_v39 = vadd.f32 %v4468_v11, %v5104_v6  ;;  %v5105_v21 = vld [vmem:[#allocation13_spill] sm:$0xff]  ;;  %v5109_v54 = vld [vmem:[#allocation16_spill] sm:$0xff] }
 0x173   : > { %v1671_v28 = vmax.f32 %v4584_v4, 0.0  ;;  %v1673_v19 = vmax.f32 %v4590_v22, 0.0  ;;  %v4608_v37 = vadd.f32 %v4132_v47, %v1485_v23  ;;  %v1692_v30 = vpack.c.bf16 %v1640_v17, %v1624_v60  ;;  %v5129_v4 = vld [vmem:[#allocation38_spill] sm:$0xff] }
 0x174   : > { %v1626_v61 = vmax.f32 %v1562_v41, 0.0  ;;  %v1642_v48 = vmax.f32 %v1578_v62, 0.0  ;;  %v1404_v49 = vadd.f32 %v5105_v21, %v1098_v39  ;;  %v1151_v9 = vadd.f32 %v4477_v8, %v5106_v44  ;;  %v5110_v8 = vld [vmem:[#allocation15_spill] sm:$0xff]  ;;  %v5111_v62 = vld [vmem:[#allocation18_spill] sm:$0xff] }
 0x175   : > { %v1627_v20 = vmax.f32 %v4599_v27, 0.0  ;;  %1943 = vmatprep.subr.bf16.mxu0 %v1692_v30  ;;  %v5107_v11 = vmax.f32 %v4412_v3, 0.0  ;;  %v5108_v10 = vmax.f32 %v4424_v12, 0.0  ;;  %v1100_v60 = vadd.f32 %v4479_v16, %v5109_v54  ;;  %v5112_v3 = vld [vmem:[#allocation17_spill] sm:$0xff]  ;;  %v5114_v39 = vld [vmem:[#allocation22_spill] sm:$0xff] }
 0x176   : > { %v1694_v23 = vpack.c.bf16 %v1642_v48, %v1626_v61  ;;  %v1484_v17 = vmul.f32 %v4032_v15, %v1404_v49  ;;  %v1406_v41 = vadd.f32 %v5110_v8, %v1151_v9  ;;  %v1153_v6 = vadd.f32 %v4489_v33, %v5111_v62  ;;  %v5116_v48 = vld [vmem:[#allocation19_spill] sm:$0xff]  ;;  %v5117_v33 = vld [vmem:[#allocation26_spill] sm:$0xff] }
 0x177   : > { %v1691_v40 = vpack.c.bf16 %v1639_v29, %v5107_v11  ;;  %v1693_v63 = vpack.c.bf16 %v1641_v14, %v5108_v10  ;;  %v1419_v52 = vadd.f32 %v5112_v3, %v1100_v60  ;;  %v5113_v29 = vld [vmem:[#allocation20_spill] sm:$0xff]  ;;  %v1155_v53 = vadd.f32 %v4500_v59, %v5114_v39  ;;  %v5118_v59 = vld [vmem:[#allocation21_spill] sm:$0xff]  ;;  %v5119_v9 = vld [vmem:[#allocation23_spill] sm:$0xff] }
 0x178   : > { %v1102_v12 = vadd.f32 %v4491_v1, %v5113_v29  ;;  %v5115_v14 = vld [vmem:[#allocation24_spill] sm:$0xff]  ;;  %v1629_v30 = vmax.f32 %v4608_v37, 0.0  ;;  %1996 = vmatprep.subr.bf16.mxu1 %v1694_v23  ;;  %v1486_v61 = vmul.f32 %v4032_v15, %v1406_v41  ;;  %v1421_v21 = vadd.f32 %v5116_v48, %v1153_v6  ;;  %2980 = vmatmul.mubr.msk.bf16.gmra.mrb[44].mxu0 %vm736_vm0, %v4445_v5  ;;  %v5120_v11 = vld [vmem:[#allocation25_spill] sm:$0xff]  ;;  %v5121_v15 = vld [vmem:[#allocation27_spill] sm:$0xff] }
 0x179   : > { %1944 = vmatpush1.bf16.msra.mxu0 %v1691_v40  ;;  %v1106_v16 = vadd.f32 %v4525_v0, %v5115_v14  ;;  %v1159_v49 = vadd.f32 %v4538_v32, %v5117_v33  ;;  %1997 = vmatpush1.bf16.msra.mxu1 %v1693_v63  ;;  %v1499_v1 = vmul.f32 %v4194_v50, %v1419_v52  ;;  %v5122_v14 = vld [vmem:[#allocation28_spill] sm:$0xff] }
 0x17a   : > { %v1420_v44 = vadd.f32 %v5118_v59, %v1102_v12  ;;  %v1422_v0 = vadd.f32 %v5119_v9, %v1155_v53  ;;  %v1501_v10 = vmul.f32 %v4194_v50, %v1421_v21  ;;  %2982 = vmatmul.mubr.msk.bf16.gmra.mrb[44].mxu1 %vm736_vm0, %v4445_v5  ;;  %v1592_v60 = vadd.f32 %v4256_v55, %v4562_v2 }
 0x17b   : > { %v1435_v40 = vadd.f32 %v5120_v11, %v1106_v16  ;;  %v1437_v54 = vadd.f32 %v5121_v15, %v1159_v49  ;;  %v1608_v32 = vadd.f32 %v4272_v57, %v1528_v26  ;;  %v1579_v63 = vadd.f32 %v4208_v38, %v1499_v1  ;;  %1975 = vmatprep.mubr.bf16.mxu0 %v5076_v24  ;;  %v5123_v49 = vld [vmem:[#allocation30_spill] sm:$0xff] }
 0x17c   : > { %v1500_v23 = vmul.f32 %v4194_v50, %v1420_v44  ;;  %v1502_v8 = vmul.f32 %v4194_v50, %v1422_v0  ;;  %v1581_v62 = vadd.f32 %v4208_v38, %v1501_v10  ;;  %v1656_v3 = vmax.f32 %v1592_v60, 0.0  ;;  %2028 = vmatprep.mubr.bf16.mxu1 %v5076_v24  ;;  %v5125_v0 = vld [vmem:[#allocation31_spill] sm:$0xff]  ;;  %v5127_v10 = vld [vmem:[#allocation34_spill] sm:$0xff] }
 0x17d   : > { %v1515_v41 = vmul.f32 %v4225_v45, %v1435_v40  ;;  %v1517_v6 = vmul.f32 %v4225_v45, %v1437_v54  ;;  %v1672_v52 = vmax.f32 %v1608_v32, 0.0  ;;  %v1643_v2 = vmax.f32 %v1579_v63, 0.0  ;;  %v5126_v40 = vld [vmem:[#allocation32_spill] sm:$0xff]  ;;  %v5132_v32 = vld [vmem:[#allocation37_spill] sm:$0xff] }
 0x17e   : > { %v1594_v29 = vadd.f32 %v4256_v55, %v4576_v18  ;;  %v1610_v50 = vadd.f32 %v4272_v57, %v1530_v35  ;;  %v1645_v12 = vmax.f32 %v1581_v62, 0.0  ;;  %v1108_v16 = vadd.f32 %v4540_v51, %v5122_v14  ;;  %v5124_v18 = vld [vmem:[#allocation29_spill] sm:$0xff] }
 0x17f   : > { %v4662_v26 = vadd.f32 %v4256_v55, %v1515_v41  ;;  %v4668_v39 = vadd.f32 %v4256_v55, %v1517_v6  ;;  %v1708_v53 = vpack.c.bf16 %v1672_v52, %v1656_v3  ;;  %v1161_v1 = vadd.f32 %v4546_v42, %v5123_v49  ;;  %v5133_v41 = vld [vmem:[#allocation39_spill] sm:$0xff] }
 0x180   : > { %v1658_v21 = vmax.f32 %v1594_v29, 0.0  ;;  %v1674_v33 = vmax.f32 %v1610_v50, 0.0  ;;  %v1436_v35 = vadd.f32 %v5124_v18, %v1108_v16  ;;  %v1707_v44 = vpack.c.bf16 %v1671_v28, %v1655_v58  ;;  %v5130_v28 = vld [vmem:[#allocation33_spill] sm:$0xff]  ;;  %v4751_v18 = vpop.permute.xlu0 %2160 }
 0x181   : > { %v1659_v48 = vmax.f32 %v4662_v26, 0.0  ;;  %v1661_v59 = vmax.f32 %v4668_v39, 0.0  ;;  %1945 = vmatprep.subr.bf16.mxu0 %v1708_v53  ;;  %v1709_v51 = vpack.c.bf16 %v1673_v19, %v1657_v43  ;;  %v1438_v11 = vadd.f32 %v5125_v0, %v1161_v1 }
 0x182   : > { %v1710_v9 = vpack.c.bf16 %v1674_v33, %v1658_v21  ;;  %v1110_v42 = vadd.f32 %v4548_v31, %v5126_v40  ;;  %v1163_v15 = vadd.f32 %v4557_v36, %v5127_v10  ;;  %v1516_v54 = vmul.f32 %v4225_v45, %v1436_v35  ;;  %1946 = vmatpush1.bf16.msra.mxu0 %v1707_v44  ;;  %v5131_v31 = vld [vmem:[#allocation35_spill] sm:$0xff] }
 0x183   : > { %v1112_v58 = vadd.f32 %v4559_v7, %v5128_v56  ;;  %v1165_v13 = vadd.f32 %v4569_v46, %v5129_v4  ;;  %v1564_v43 = vadd.f32 %v4132_v47, %v1484_v17  ;;  %v1518_v22 = vmul.f32 %v4225_v45, %v1438_v11 }
 0x184   : > { %1998 = vmatprep.subr.bf16.mxu1 %v1710_v9  ;;  %v1451_v19 = vadd.f32 %v5130_v28, %v1110_v42  ;;  %v1453_v60 = vadd.f32 %v5131_v31, %v1163_v15  ;;  %v1580_v36 = vadd.f32 %v4208_v38, %v1500_v23  ;;  %v1566_v6 = vadd.f32 %v4132_v47, %v1486_v61  ;;  %v4756_v9 = vpop.permute.xlu0 %2164 }
 0x185   : > { %1999 = vmatpush1.bf16.msra.mxu1 %v1709_v51  ;;  %v1452_v63 = vadd.f32 %v5132_v32, %v1112_v58  ;;  %v1454_v62 = vadd.f32 %v5133_v41, %v1165_v13  ;;  %v1628_v7 = vmax.f32 %v1564_v43, 0.0  ;;  %2983 = vmatmul.mubr.msk.bf16.vlgmr.msra.gmra.mrb[48].mxu0 %vm736_vm0, %v4370_v34  ;;  %v1582_v3 = vadd.f32 %v4208_v38, %v1502_v8 }
 0x186   : > { %v1531_v46 = vmul.f32 %v4250_v25, %v1451_v19  ;;  %v1533_v17 = vmul.f32 %v4250_v25, %v1453_v60  ;;  %v1644_v45 = vmax.f32 %v1580_v36, 0.0  ;;  %v1630_v26 = vmax.f32 %v1566_v6, 0.0  ;;  %1985 = vmatprep.mubr.bf16.mxu0 %v5076_v24 }
 0x187   : > { %v1532_v23 = vmul.f32 %v4250_v25, %v1452_v63  ;;  %v1534_v52 = vmul.f32 %v4250_v25, %v1454_v62  ;;  %v1695_v29 = vpack.c.bf16 %v1643_v2, %v1627_v20  ;;  %v1646_v39 = vmax.f32 %v1582_v3, 0.0 }
 0x188   : > { %v1611_v47 = vadd.f32 %v4272_v57, %v1531_v46  ;;  %v1613_v61 = vadd.f32 %v4272_v57, %v1533_v17  ;;  %2985 = vmatmul.mubr.msk.bf16.vlgmr.msra.gmra.mrb[48].mxu1 %vm736_vm0, %v4370_v34  ;;  %v1696_v50 = vpack.c.bf16 %v1644_v45, %v1628_v7  ;;  %v1697_v38 = vpack.c.bf16 %v1645_v12, %v1629_v30 }
 0x189   : > { %2038 = vmatprep.mubr.bf16.mxu1 %v5076_v24  ;;  %v1596_v25 = vadd.f32 %v4256_v55, %v1516_v54  ;;  %v1612_v27 = vadd.f32 %v4272_v57, %v1532_v23  ;;  %v1598_v20 = vadd.f32 %v4256_v55, %v1518_v22  ;;  %v1698_v53 = vpack.c.bf16 %v1646_v39, %v1630_v26 }
 0x18a   : > { %v1675_v8 = vmax.f32 %v1611_v47, 0.0  ;;  %v1677_v2 = vmax.f32 %v1613_v61, 0.0  ;;  %2049 = vmatprep.subr.bf16.mxu0 %v1696_v50  ;;  %v1614_v14 = vadd.f32 %v4272_v57, %v1534_v52  ;;  %v3223_v57 = vmov 4  }
 0x18b   : > { %2050 = vmatpush1.bf16.msra.mxu0 %v1695_v29  ;;  %v1660_v16 = vmax.f32 %v1596_v25, 0.0  ;;  %v1676_v21 = vmax.f32 %v1612_v27, 0.0  ;;  %2102 = vmatprep.subr.bf16.mxu1 %v1698_v53  ;;  %v1662_v37 = vmax.f32 %v1598_v20, 0.0 }
 0x18c   : > { %v1678_v30 = vmax.f32 %v1614_v14, 0.0  ;;  %v1711_v12 = vpack.c.bf16 %v1675_v8, %v1659_v48  ;;  %v1713_v33 = vpack.c.bf16 %v1677_v2, %v1661_v59  ;;  %2103 = vmatpush1.bf16.msra.mxu1 %v1697_v38  ;;  %3090 = vset.pattern.permute.xlu1 %v3223_v57  ;;  %v3096_v48 = vld [vmem:[%s4952_s3] sm:$0xff]  ;;  %v4773_v45 = vpop.permute.xlu0 %2244 }
 0x18d   : > { %v1712_v49 = vpack.c.bf16 %v1676_v21, %v1660_v16  ;;  %2984 = vmatmul.mubr.msk.bf16.gmra.mrb[52].mxu0 %vm736_vm0, %v4445_v5  ;;  %3091 = vset.pattern.permute.xlu0 %v3223_v57 }
 0x18e   : > { %v1714_v55 = vpack.c.bf16 %v1678_v30, %v1662_v37  ;;  %2081 = vmatprep.mubr.bf16.mxu0 %v5076_v24  ;;  %2413 = vperm.xlu1 %3090, %v3096_v48  }
 0x18f   : > { %2051 = vmatprep.subr.bf16.mxu0 %v1712_v49 }
 0x190   : > { %2986 = vmatmul.mubr.msk.bf16.gmra.mrb[52].mxu1 %vm736_vm0, %v4445_v5  ;;  %2104 = vmatprep.subr.bf16.mxu1 %v1714_v55 }
 0x191   : > { %2052 = vmatpush1.bf16.msra.mxu0 %v1711_v12  ;;  %2105 = vmatpush1.bf16.msra.mxu1 %v1713_v33 }
 0x192   : > { %2134 = vmatprep.mubr.bf16.mxu1 %v5076_v24 }
 0x195   : > { %2987 = vmatmul.mubr.msk.bf16.vlgmr.msra.gmra.mrb[56].mxu0 %vm736_vm0, %v4370_v34 }
 0x196   : > { %2091 = vmatprep.mubr.bf16.mxu0 %v5076_v24 }
 0x198   : > { %2989 = vmatmul.mubr.msk.bf16.vlgmr.msra.gmra.mrb[56].mxu1 %vm736_vm0, %v4370_v34  ;;  %v4745_v34 = vpop.permute.xlu1 %2156 }
 0x199   : > { %2144 = vmatprep.mubr.bf16.mxu1 %v5076_v24 }
 0x19c   : > { %v4747_v1 = vpop.permute.xlu1 %2236 }
 0x19d   : > { %2988 = vmatmul.mubr.msk.bf16.gmra.mrb[60].mxu0 %vm736_vm0, %v4445_v5 }
 0x19e   : > { %2451 = vmatprep.mubr.bf16.mxu0 %v5076_v24 }
 0x1a0   : > { %2990 = vmatmul.mubr.msk.bf16.gmra.mrb[60].mxu1 %vm736_vm0, %v4445_v5  ;;  %v4749_v59 = vpop.permute.xlu1 %2240 }
 0x1a1   : > { %2492 = vmatprep.mubr.bf16.mxu1 %v5076_v24 }
 0x1a4   : > { %v4753_v5 = vpop.permute.xlu1 %2168 }
 0x1a8   : > { %v4775_v23 = vpop.permute.xlu1 %2248 }
 0x22e   : > { %v1765_v35 = vpop.f32.mrb[32].mxu0 }
 0x22f   : > { %v2171_v44 = vmul.f32 %v4745_v34, %v1765_v35  ;;  %v1767_v51 = vpop.f32.mrb[33].mxu0  ;;  %v1818_v0 = vpop.f32.mrb[32].mxu1 }
 0x230   : > { %v2172_v11 = vmul.f32 %v4745_v34, %v1767_v51  ;;  %v1769_v40 = vpop.f32.mrb[34].mxu0  ;;  %v2173_v42 = vmul.f32 %v4745_v34, %v1818_v0  ;;  %v1820_v10 = vpop.f32.mrb[33].mxu1 }
 0x231   : > { %v1771_v15 = vpop.f32.mrb[35].mxu0  ;;  %v2187_v54 = vmul.f32 %v4751_v18, %v1769_v40  ;;  %v2251_v56 = vadd.f32 %v4747_v1, %v2171_v44  ;;  %v2174_v4 = vmul.f32 %v4745_v34, %v1820_v10  ;;  %v1822_v13 = vpop.f32.mrb[34].mxu1 }
 0x232   : > { %v2252_v58 = vadd.f32 %v4747_v1, %v2172_v11  ;;  %v2188_v43 = vmul.f32 %v4751_v18, %v1771_v15  ;;  %v1824_v22 = vpop.f32.mrb[35].mxu1  ;;  %v2189_v19 = vmul.f32 %v4751_v18, %v1822_v13  ;;  %v2253_v31 = vadd.f32 %v4747_v1, %v2173_v42 }
 0x233   : > { %v2267_v28 = vadd.f32 %v4749_v59, %v2187_v54  ;;  %v2254_v60 = vadd.f32 %v4747_v1, %v2174_v4  ;;  %v2190_v32 = vmul.f32 %v4751_v18, %v1824_v22  ;;  %v2315_v63 = vmax.f32 %v2251_v56, 0.0 }
 0x234   : > { %v2268_v36 = vadd.f32 %v4749_v59, %v2188_v43  ;;  %v2269_v62 = vadd.f32 %v4749_v59, %v2189_v19  ;;  %v2316_v7 = vmax.f32 %v2252_v58, 0.0  ;;  %v2317_v26 = vmax.f32 %v2253_v31, 0.0 }
 0x235   : > { %v2331_v41 = vmax.f32 %v2267_v28, 0.0  ;;  %v2270_v17 = vadd.f32 %v4749_v59, %v2190_v32  ;;  %v2318_v61 = vmax.f32 %v2254_v60, 0.0 }
 0x236   : > { %v1775_v6 = vpop.f32.mrb[36].mxu0  ;;  %v2332_v46 = vmax.f32 %v2268_v36, 0.0  ;;  %v2333_v29 = vmax.f32 %v2269_v62, 0.0  ;;  %v4797_v36 = vld [vmem:[%s4951_s2 + $0x20] sm:$0x3] }
 0x237   : > { %v1777_v3 = vpop.f32.mrb[37].mxu0  ;;  %v2380_v52 = vpack.c.bf16 %v2331_v41, %v2315_v63  ;;  %v2203_v47 = vmul.f32 %v4756_v9, %v1775_v6  ;;  %v1828_v50 = vpop.f32.mrb[36].mxu1  ;;  %v2334_v25 = vmax.f32 %v2270_v17, 0.0 }
 0x238   : > { %v1779_v39 = vpop.f32.mrb[38].mxu0  ;;  %v2381_v38 = vpack.c.bf16 %v2332_v46, %v2316_v7  ;;  %v2204_v27 = vmul.f32 %v4756_v9, %v1777_v3  ;;  %v1830_v20 = vpop.f32.mrb[37].mxu1  ;;  %v2382_v53 = vpack.c.bf16 %v2333_v29, %v2317_v26  ;;  %v2205_v16 = vmul.f32 %v4756_v9, %v1828_v50 }
 0x239   : > { %v2219_v8 = vmul.f32 %v4753_v5, %v1779_v39  ;;  %v1781_v2 = vpop.f32.mrb[39].mxu0  ;;  %v2283_v14 = vadd.f32 %v4773_v45, %v2203_v47  ;;  %v1832_v21 = vpop.f32.mrb[38].mxu1  ;;  %v2383_v30 = vpack.c.bf16 %v2334_v25, %v2318_v61  ;;  %v2206_v33 = vmul.f32 %v4756_v9, %v1830_v20 }
 0x23a   : > { %v2220_v37 = vmul.f32 %v4753_v5, %v1781_v2  ;;  %2419 = vmatprep.subr.bf16.mxu0 %v2381_v38  ;;  %v2284_v12 = vadd.f32 %v4773_v45, %v2204_v27  ;;  %v2221_v49 = vmul.f32 %v4753_v5, %v1832_v21  ;;  %v1834_v55 = vpop.f32.mrb[39].mxu1  ;;  %v2285_v48 = vadd.f32 %v4773_v45, %v2205_v16 }
 0x23b   : > { %2420 = vmatpush1.bf16.msra.mxu0 %v2380_v52  ;;  %v2299_v57 = vadd.f32 %v4775_v23, %v2219_v8  ;;  %v2222_v35 = vmul.f32 %v4753_v5, %v1834_v55  ;;  %2460 = vmatprep.subr.bf16.mxu1 %v2383_v30  ;;  %v2286_v51 = vadd.f32 %v4773_v45, %v2206_v33  ;;  %v2347_v0 = vmax.f32 %v2283_v14, 0.0 }
 0x23c   : > { %v2300_v44 = vadd.f32 %v4775_v23, %v2220_v37  ;;  %2461 = vmatpush1.bf16.msra.mxu1 %v2382_v53  ;;  %v2301_v40 = vadd.f32 %v4775_v23, %v2221_v49  ;;  %v2348_v42 = vmax.f32 %v2284_v12, 0.0  ;;  %v2349_v56 = vmax.f32 %v2285_v48, 0.0 }
 0x23d   : > { %v2363_v11 = vmax.f32 %v2299_v57, 0.0  ;;  %v2302_v15 = vadd.f32 %v4775_v23, %v2222_v35  ;;  %v2350_v13 = vmax.f32 %v2286_v51, 0.0 }
 0x23e   : > { %v2364_v10 = vmax.f32 %v2300_v44, 0.0  ;;  %v2365_v58 = vmax.f32 %v2301_v40, 0.0 }
 0x23f   : > { %v2396_v54 = vpack.c.bf16 %v2363_v11, %v2347_v0  ;;  %v2366_v43 = vmax.f32 %v2302_v15, 0.0 }
 0x240   : > { %v2397_v4 = vpack.c.bf16 %v2364_v10, %v2348_v42  ;;  %v2398_v22 = vpack.c.bf16 %v2365_v58, %v2349_v56 }
 0x241   : > { %v2399_v19 = vpack.c.bf16 %v2366_v43, %v2350_v13 }
 0x242   : > { %2421 = vmatprep.subr.bf16.mxu0 %v2397_v4 }
 0x243   : > { %v1871_v28 = vpop.f32.mrb[40].mxu0  ;;  %2422 = vmatpush1.bf16.msra.mxu0 %v2396_v54  ;;  %v1924_v32 = vpop.f32.mrb[40].mxu1  ;;  %2462 = vmatprep.subr.bf16.mxu1 %v2399_v19 }
 0x244   : > { %v2175_v31 = vmul.f32 %v4745_v34, %v1871_v28  ;;  %v1873_v60 = vpop.f32.mrb[41].mxu0  ;;  %v2177_v7 = vmul.f32 %v4745_v34, %v1924_v32  ;;  %v1926_v6 = vpop.f32.mrb[41].mxu1  ;;  %2463 = vmatpush1.bf16.msra.mxu1 %v2398_v22 }
 0x245   : > { %v2176_v63 = vmul.f32 %v4745_v34, %v1873_v60  ;;  %v1875_v41 = vpop.f32.mrb[42].mxu0  ;;  %v2178_v52 = vmul.f32 %v4745_v34, %v1926_v6  ;;  %v1928_v26 = vpop.f32.mrb[42].mxu1 }
 0x246   : > { %v2255_v62 = vadd.f32 %v4747_v1, %v2175_v31  ;;  %v2191_v46 = vmul.f32 %v4751_v18, %v1875_v41  ;;  %v1877_v17 = vpop.f32.mrb[43].mxu0  ;;  %2991 = vmatmul.mubr.msk.bf16.vlgmr.msra.gmra.mrb[64].mxu0 %vm736_vm0, %v4797_v36  ;;  %v2257_v47 = vadd.f32 %v4747_v1, %v2177_v7  ;;  %v2193_v50 = vmul.f32 %v4751_v18, %v1928_v26  ;;  %v1930_v39 = vpop.f32.mrb[43].mxu1 }
 0x247   : > { %v2256_v3 = vadd.f32 %v4747_v1, %v2176_v63  ;;  %v2192_v29 = vmul.f32 %v4751_v18, %v1877_v17  ;;  %2533 = vmatprep.mubr.bf16.mxu0 %v5076_v24  ;;  %v2258_v38 = vadd.f32 %v4747_v1, %v2178_v52  ;;  %v2194_v27 = vmul.f32 %v4751_v18, %v1930_v39 }
 0x248   : > { %v2271_v61 = vadd.f32 %v4749_v59, %v2191_v46  ;;  %2992 = vmatmul.mubr.msk.bf16.vlgmr.msra.gmra.mrb[64].mxu1 %vm736_vm0, %v4797_v36  ;;  %v2319_v20 = vmax.f32 %v2255_v62, 0.0  ;;  %v2273_v2 = vadd.f32 %v4749_v59, %v2193_v50  ;;  %v2321_v21 = vmax.f32 %v2257_v47, 0.0 }
 0x249   : > { %v2272_v25 = vadd.f32 %v4749_v59, %v2192_v29  ;;  %2574 = vmatprep.mubr.bf16.mxu1 %v5076_v24  ;;  %v2320_v53 = vmax.f32 %v2256_v3, 0.0  ;;  %v2274_v16 = vadd.f32 %v4749_v59, %v2194_v27  ;;  %v2322_v33 = vmax.f32 %v2258_v38, 0.0 }
 0x24a   : > { %v2335_v8 = vmax.f32 %v2271_v61, 0.0  ;;  %v2337_v30 = vmax.f32 %v2273_v2, 0.0 }
 0x24b   : > { %v2336_v14 = vmax.f32 %v2272_v25, 0.0  ;;  %v1881_v12 = vpop.f32.mrb[44].mxu0  ;;  %v2338_v49 = vmax.f32 %v2274_v16, 0.0 }
 0x24c   : > { %v2384_v37 = vpack.c.bf16 %v2335_v8, %v2319_v20  ;;  %v2207_v55 = vmul.f32 %v4756_v9, %v1881_v12  ;;  %v1883_v57 = vpop.f32.mrb[45].mxu0  ;;  %v2386_v35 = vpack.c.bf16 %v2337_v30, %v2321_v21 }
 0x24d   : > { %v2385_v48 = vpack.c.bf16 %v2336_v14, %v2320_v53  ;;  %v1934_v44 = vpop.f32.mrb[44].mxu1  ;;  %v2208_v51 = vmul.f32 %v4756_v9, %v1883_v57  ;;  %v1885_v0 = vpop.f32.mrb[46].mxu0  ;;  %v2387_v54 = vpack.c.bf16 %v2338_v49, %v2322_v33 }
 0x24e   : > { %v2287_v11 = vadd.f32 %v4773_v45, %v2207_v55  ;;  %v2209_v40 = vmul.f32 %v4756_v9, %v1934_v44  ;;  %v1936_v42 = vpop.f32.mrb[45].mxu1  ;;  %v2223_v10 = vmul.f32 %v4753_v5, %v1885_v0  ;;  %v1887_v15 = vpop.f32.mrb[47].mxu0 }
 0x24f   : > { %2501 = vmatprep.subr.bf16.mxu0 %v2385_v48  ;;  %v2288_v56 = vadd.f32 %v4773_v45, %v2208_v51  ;;  %v2210_v58 = vmul.f32 %v4756_v9, %v1936_v42  ;;  %v1938_v4 = vpop.f32.mrb[46].mxu1  ;;  %v2224_v13 = vmul.f32 %v4753_v5, %v1887_v15  ;;  %2542 = vmatprep.subr.bf16.mxu1 %v2387_v54 }
 0x250   : > { %2502 = vmatpush1.bf16.msra.mxu0 %v2384_v37  ;;  %v2289_v43 = vadd.f32 %v4773_v45, %v2209_v40  ;;  %v2303_v22 = vadd.f32 %v4775_v23, %v2223_v10  ;;  %v2225_v28 = vmul.f32 %v4753_v5, %v1938_v4  ;;  %v1940_v19 = vpop.f32.mrb[47].mxu1  ;;  %2543 = vmatpush1.bf16.msra.mxu1 %v2386_v35  ;;  %v2351_v63 = vmax.f32 %v2287_v11, 0.0 }
 0x251   : > { %v2290_v31 = vadd.f32 %v4773_v45, %v2210_v58  ;;  %v2304_v60 = vadd.f32 %v4775_v23, %v2224_v13  ;;  %v2226_v32 = vmul.f32 %v4753_v5, %v1940_v19  ;;  %v2352_v7 = vmax.f32 %v2288_v56, 0.0 }
 0x252   : > { %v2367_v41 = vmax.f32 %v2303_v22, 0.0  ;;  %v2305_v62 = vadd.f32 %v4775_v23, %v2225_v28  ;;  %v2353_v17 = vmax.f32 %v2289_v43, 0.0 }
 0x253   : > { %v2368_v6 = vmax.f32 %v2304_v60, 0.0  ;;  %v2306_v46 = vadd.f32 %v4775_v23, %v2226_v32  ;;  %v2354_v26 = vmax.f32 %v2290_v31, 0.0 }
 0x254   : > { %v2400_v3 = vpack.c.bf16 %v2367_v41, %v2351_v63  ;;  %v2369_v52 = vmax.f32 %v2305_v62, 0.0 }
 0x255   : > { %v2370_v29 = vmax.f32 %v2306_v46, 0.0  ;;  %v2401_v47 = vpack.c.bf16 %v2368_v6, %v2352_v7 }
 0x256   : > { %v2402_v61 = vpack.c.bf16 %v2369_v52, %v2353_v17 }
 0x257   : > { %2503 = vmatprep.subr.bf16.mxu0 %v2401_v47  ;;  %v2403_v50 = vpack.c.bf16 %v2370_v29, %v2354_v26 }
 0x258   : > { %v1977_v39 = vpop.f32.mrb[48].mxu0  ;;  %2504 = vmatpush1.bf16.msra.mxu0 %v2400_v3 }
 0x259   : > { %v2179_v38 = vmul.f32 %v4745_v34, %v1977_v39  ;;  %v1979_v25 = vpop.f32.mrb[49].mxu0  ;;  %2544 = vmatprep.subr.bf16.mxu1 %v2403_v50 }
 0x25a   : > { %v2180_v20 = vmul.f32 %v4745_v34, %v1979_v25  ;;  %v1981_v8 = vpop.f32.mrb[50].mxu0  ;;  %2545 = vmatpush1.bf16.msra.mxu1 %v2402_v61 }
 0x25b   : > { %v2030_v27 = vpop.f32.mrb[48].mxu1  ;;  %v2259_v2 = vadd.f32 %v4747_v1, %v2179_v38  ;;  %v2195_v16 = vmul.f32 %v4751_v18, %v1981_v8  ;;  %v1983_v21 = vpop.f32.mrb[51].mxu0  ;;  %2993 = vmatmul.mubr.msk.bf16.vlgmr.msra.gmra.mrb[68].mxu0 %vm736_vm0, %v4797_v36 }
 0x25c   : > { %v2181_v53 = vmul.f32 %v4745_v34, %v2030_v27  ;;  %v2032_v14 = vpop.f32.mrb[49].mxu1  ;;  %v2260_v37 = vadd.f32 %v4747_v1, %v2180_v20  ;;  %v2196_v33 = vmul.f32 %v4751_v18, %v1983_v21  ;;  %2615 = vmatprep.mubr.bf16.mxu0 %v5076_v24 }
 0x25d   : > { %v2182_v30 = vmul.f32 %v4745_v34, %v2032_v14  ;;  %v2034_v12 = vpop.f32.mrb[50].mxu1  ;;  %v2275_v55 = vadd.f32 %v4749_v59, %v2195_v16  ;;  %2994 = vmatmul.mubr.msk.bf16.vlgmr.msra.gmra.mrb[68].mxu1 %vm736_vm0, %v4797_v36  ;;  %v2323_v0 = vmax.f32 %v2259_v2, 0.0 }
 0x25e   : > { %v2261_v49 = vadd.f32 %v4747_v1, %v2181_v53  ;;  %v2197_v57 = vmul.f32 %v4751_v18, %v2034_v12  ;;  %v2036_v48 = vpop.f32.mrb[51].mxu1  ;;  %v2276_v44 = vadd.f32 %v4749_v59, %v2196_v33  ;;  %2656 = vmatprep.mubr.bf16.mxu1 %v5076_v24  ;;  %v2324_v42 = vmax.f32 %v2260_v37, 0.0 }
 0x25f   : > { %v2262_v35 = vadd.f32 %v4747_v1, %v2182_v30  ;;  %v2198_v51 = vmul.f32 %v4751_v18, %v2036_v48  ;;  %v2339_v11 = vmax.f32 %v2275_v55, 0.0 }
 0x260   : > { %v2277_v40 = vadd.f32 %v4749_v59, %v2197_v57  ;;  %v2340_v10 = vmax.f32 %v2276_v44, 0.0  ;;  %v1987_v54 = vpop.f32.mrb[52].mxu0  ;;  %v2325_v56 = vmax.f32 %v2261_v49, 0.0 }
 0x261   : > { %v2278_v15 = vadd.f32 %v4749_v59, %v2198_v51  ;;  %v2388_v58 = vpack.c.bf16 %v2339_v11, %v2323_v0  ;;  %v2211_v13 = vmul.f32 %v4756_v9, %v1987_v54  ;;  %v1989_v43 = vpop.f32.mrb[53].mxu0  ;;  %v2326_v22 = vmax.f32 %v2262_v35, 0.0 }
 0x262   : > { %v2341_v4 = vmax.f32 %v2277_v40, 0.0  ;;  %v2212_v31 = vmul.f32 %v4756_v9, %v1989_v43  ;;  %v1991_v60 = vpop.f32.mrb[54].mxu0  ;;  %v2389_v32 = vpack.c.bf16 %v2340_v10, %v2324_v42 }
 0x263   : > { %v2342_v28 = vmax.f32 %v2278_v15, 0.0  ;;  %v2040_v19 = vpop.f32.mrb[52].mxu1  ;;  %v2291_v41 = vadd.f32 %v4773_v45, %v2211_v13  ;;  %v2227_v6 = vmul.f32 %v4753_v5, %v1991_v60  ;;  %v1993_v46 = vpop.f32.mrb[55].mxu0 }
 0x264   : > { %v2390_v63 = vpack.c.bf16 %v2341_v4, %v2325_v56  ;;  %v2213_v62 = vmul.f32 %v4756_v9, %v2040_v19  ;;  %v2042_v7 = vpop.f32.mrb[53].mxu1  ;;  %v2292_v17 = vadd.f32 %v4773_v45, %v2212_v31  ;;  %v2228_v26 = vmul.f32 %v4753_v5, %v1993_v46  ;;  %2583 = vmatprep.subr.bf16.mxu0 %v2389_v32 }
 0x265   : > { %v2214_v3 = vmul.f32 %v4756_v9, %v2042_v7  ;;  %v2044_v52 = vpop.f32.mrb[54].mxu1  ;;  %v2391_v29 = vpack.c.bf16 %v2342_v28, %v2326_v22  ;;  %v2307_v61 = vadd.f32 %v4775_v23, %v2227_v6  ;;  %2584 = vmatpush1.bf16.msra.mxu0 %v2388_v58  ;;  %v2355_v20 = vmax.f32 %v2291_v41, 0.0 }
 0x266   : > { %v2293_v47 = vadd.f32 %v4773_v45, %v2213_v62  ;;  %v2229_v50 = vmul.f32 %v4753_v5, %v2044_v52  ;;  %v2046_v39 = vpop.f32.mrb[55].mxu1  ;;  %v2308_v25 = vadd.f32 %v4775_v23, %v2228_v26  ;;  %v2356_v53 = vmax.f32 %v2292_v17, 0.0 }
 0x267   : > { %v2294_v38 = vadd.f32 %v4773_v45, %v2214_v3  ;;  %v2230_v27 = vmul.f32 %v4753_v5, %v2046_v39  ;;  %2624 = vmatprep.subr.bf16.mxu1 %v2391_v29  ;;  %v2371_v8 = vmax.f32 %v2307_v61, 0.0 }
 0x268   : > { %v2309_v2 = vadd.f32 %v4775_v23, %v2229_v50  ;;  %2625 = vmatpush1.bf16.msra.mxu1 %v2390_v63  ;;  %v2372_v14 = vmax.f32 %v2308_v25, 0.0  ;;  %v2083_v21 = vpop.f32.mrb[56].mxu0  ;;  %v2357_v37 = vmax.f32 %v2293_v47, 0.0 }
 0x269   : > { %v2310_v16 = vadd.f32 %v4775_v23, %v2230_v27  ;;  %v2404_v30 = vpack.c.bf16 %v2371_v8, %v2355_v20  ;;  %v2183_v33 = vmul.f32 %v4745_v34, %v2083_v21  ;;  %v2085_v49 = vpop.f32.mrb[57].mxu0  ;;  %v2358_v55 = vmax.f32 %v2294_v38, 0.0 }
 0x26a   : > { %v2373_v12 = vmax.f32 %v2309_v2, 0.0  ;;  %v2184_v35 = vmul.f32 %v4745_v34, %v2085_v49  ;;  %v2087_v44 = vpop.f32.mrb[58].mxu0  ;;  %v2405_v51 = vpack.c.bf16 %v2372_v14, %v2356_v53 }
 0x26b   : > { %v2374_v57 = vmax.f32 %v2310_v16, 0.0  ;;  %v2136_v48 = vpop.f32.mrb[56].mxu1  ;;  %v2263_v11 = vadd.f32 %v4747_v1, %v2183_v33  ;;  %v2199_v10 = vmul.f32 %v4751_v18, %v2087_v44  ;;  %v2089_v15 = vpop.f32.mrb[59].mxu0 }
 0x26c   : > { %v2406_v0 = vpack.c.bf16 %v2373_v12, %v2357_v37  ;;  %v2185_v40 = vmul.f32 %v4745_v34, %v2136_v48  ;;  %v2138_v42 = vpop.f32.mrb[57].mxu1  ;;  %v2264_v54 = vadd.f32 %v4747_v1, %v2184_v35  ;;  %v2200_v4 = vmul.f32 %v4751_v18, %v2089_v15  ;;  %2585 = vmatprep.subr.bf16.mxu0 %v2405_v51 }
 0x26d   : > { %v2186_v56 = vmul.f32 %v4745_v34, %v2138_v42  ;;  %v2140_v58 = vpop.f32.mrb[58].mxu1  ;;  %v2407_v13 = vpack.c.bf16 %v2374_v57, %v2358_v55  ;;  %v2279_v22 = vadd.f32 %v4749_v59, %v2199_v10  ;;  %2586 = vmatpush1.bf16.msra.mxu0 %v2404_v30  ;;  %v2327_v34 = vmax.f32 %v2263_v11, 0.0 }
 0x26e   : > { %v2265_v43 = vadd.f32 %v4747_v1, %v2185_v40  ;;  %v2201_v28 = vmul.f32 %v4751_v18, %v2140_v58  ;;  %v2142_v19 = vpop.f32.mrb[59].mxu1  ;;  %v2280_v60 = vadd.f32 %v4749_v59, %v2200_v4  ;;  %v2328_v62 = vmax.f32 %v2264_v54, 0.0 }
 0x26f   : > { %v2266_v31 = vadd.f32 %v4747_v1, %v2186_v56  ;;  %v2202_v32 = vmul.f32 %v4751_v18, %v2142_v19  ;;  %2626 = vmatprep.subr.bf16.mxu1 %v2407_v13  ;;  %v2343_v63 = vmax.f32 %v2279_v22, 0.0 }
 0x270   : > { %v2281_v41 = vadd.f32 %v4749_v59, %v2201_v28  ;;  %2627 = vmatpush1.bf16.msra.mxu1 %v2406_v0  ;;  %v2344_v7 = vmax.f32 %v2280_v60, 0.0  ;;  %v2093_v46 = vpop.f32.mrb[60].mxu0  ;;  %2995 = vmatmul.mubr.msk.bf16.vlgmr.msra.gmra.mrb[72].mxu0 %vm736_vm0, %v4797_v36  ;;  %v2329_v17 = vmax.f32 %v2265_v43, 0.0 }
 0x271   : > { %v2282_v6 = vadd.f32 %v4749_v59, %v2202_v32  ;;  %v2392_v1 = vpack.c.bf16 %v2343_v63, %v2327_v34  ;;  %v2215_v52 = vmul.f32 %v4756_v9, %v2093_v46  ;;  %v2095_v18 = vpop.f32.mrb[61].mxu0  ;;  %2697 = vmatprep.mubr.bf16.mxu0 %v5076_v24  ;;  %v2330_v26 = vmax.f32 %v2266_v31, 0.0 }
 0x272   : > { %v2345_v3 = vmax.f32 %v2281_v41, 0.0  ;;  %v2216_v61 = vmul.f32 %v4756_v9, %v2095_v18  ;;  %v2097_v50 = vpop.f32.mrb[62].mxu0  ;;  %v2393_v39 = vpack.c.bf16 %v2344_v7, %v2328_v62 }
 0x273   : > { %v2346_v29 = vmax.f32 %v2282_v6, 0.0  ;;  %v2146_v47 = vpop.f32.mrb[60].mxu1  ;;  %2996 = vmatmul.mubr.msk.bf16.vlgmr.msra.gmra.mrb[72].mxu1 %vm736_vm0, %v4797_v36  ;;  %v2295_v38 = vadd.f32 %v4773_v45, %v2215_v52  ;;  %v2231_v20 = vmul.f32 %v4753_v5, %v2097_v50  ;;  %v2099_v8 = vpop.f32.mrb[63].mxu0 }
 0x274   : > { %v2394_v59 = vpack.c.bf16 %v2345_v3, %v2329_v17  ;;  %v2217_v25 = vmul.f32 %v4756_v9, %v2146_v47  ;;  %v2148_v27 = vpop.f32.mrb[61].mxu1  ;;  %2738 = vmatprep.mubr.bf16.mxu1 %v5076_v24  ;;  %v2296_v2 = vadd.f32 %v4773_v45, %v2216_v61  ;;  %v2232_v16 = vmul.f32 %v4753_v5, %v2099_v8 }
 0x275   : > { %v2218_v53 = vmul.f32 %v4756_v9, %v2148_v27  ;;  %v2150_v14 = vpop.f32.mrb[62].mxu1  ;;  %2665 = vmatprep.subr.bf16.mxu0 %v2393_v39  ;;  %v2395_v21 = vpack.c.bf16 %v2346_v29, %v2330_v26  ;;  %v2311_v30 = vadd.f32 %v4775_v23, %v2231_v20  ;;  %v2359_v9 = vmax.f32 %v2295_v38, 0.0 }
 0x276   : > { %v2297_v37 = vadd.f32 %v4773_v45, %v2217_v25  ;;  %v2233_v12 = vmul.f32 %v4753_v5, %v2150_v14  ;;  %v2152_v33 = vpop.f32.mrb[63].mxu1  ;;  %2666 = vmatpush1.bf16.msra.mxu0 %v2392_v1  ;;  %v2312_v24 = vadd.f32 %v4775_v23, %v2232_v16  ;;  %v2360_v35 = vmax.f32 %v2296_v2, 0.0 }
 0x277   : > { %v2298_v49 = vadd.f32 %v4773_v45, %v2218_v53  ;;  %v2234_v55 = vmul.f32 %v4753_v5, %v2152_v33  ;;  %2706 = vmatprep.subr.bf16.mxu1 %v2395_v21  ;;  %v2375_v57 = vmax.f32 %v2311_v30, 0.0 }
 0x278   : > { %v2313_v48 = vadd.f32 %v4775_v23, %v2233_v12  ;;  %2707 = vmatpush1.bf16.msra.mxu1 %v2394_v59  ;;  %v2376_v44 = vmax.f32 %v2312_v24, 0.0  ;;  %v2361_v0 = vmax.f32 %v2297_v37, 0.0 }
 0x279   : > { %v2314_v51 = vadd.f32 %v4775_v23, %v2234_v55  ;;  %v2408_v11 = vpack.c.bf16 %v2375_v57, %v2359_v9  ;;  %v2362_v45 = vmax.f32 %v2298_v49, 0.0  ;;  %v2414_v23 = vpop.permute.xlu1 %2413 }
 0x27a   : > { %v2377_v40 = vmax.f32 %v2313_v48, 0.0  ;;  %v2409_v10 = vpack.c.bf16 %v2376_v44, %v2360_v35 }
 0x27b   : > { %v2378_v42 = vmax.f32 %v2314_v51, 0.0 }
 0x27c   : > { %v2410_v15 = vpack.c.bf16 %v2377_v40, %v2361_v0  ;;  %2667 = vmatprep.subr.bf16.mxu0 %v2409_v10 }
 0x27d   : > { %v2411_v5 = vpack.c.bf16 %v2378_v42, %v2362_v45  ;;  %2668 = vmatpush1.bf16.msra.mxu0 %v2408_v11 }
 0x27f   : > { %2708 = vmatprep.subr.bf16.mxu1 %v2411_v5 }
 0x280   : > { %2709 = vmatpush1.bf16.msra.mxu1 %v2410_v15  ;;  %2997 = vmatmul.mubr.msk.bf16.vlgmr.msra.gmra.mrb[76].mxu0 %vm736_vm0, %v4797_v36 }
 0x283   : > { %2998 = vmatmul.mubr.msk.bf16.vlgmr.msra.gmra.mrb[76].mxu1 %vm736_vm0, %v4797_v36 }
 0x319   : > { %v2453_v54 = vpop.f32.mrb[64].mxu0 }
 0x31a   : > { %v2455_v56 = vpop.f32.mrb[65].mxu0  ;;  %v2454_v58 = vadd.f32 %v2453_v54, %v2414_v23 }
 0x31b   : > { %v2494_v4 = vpop.f32.mrb[64].mxu1  ;;  %v2457_v13 = vpop.f32.mrb[66].mxu0  ;;  %v2456_v43 = vadd.f32 %v2455_v56, %v2414_v23 }
 0x31c   : > { %v2496_v22 = vpop.f32.mrb[65].mxu1  ;;  %v2458_v28 = vpop.f32.mrb[67].mxu0  ;;  %v2495_v36 = vadd.f32 %v2494_v4, %v2414_v23 }
 0x31d   : > { %v2498_v19 = vpop.f32.mrb[66].mxu1  ;;  %v2497_v31 = vadd.f32 %v2496_v22, %v2414_v23  ;;  %v2763_v60 = vcombine.low %v2454_v58, %v2456_v43 }
 0x31e   : > { %v2499_v32 = vpop.f32.mrb[67].mxu1 }
 0x31f   : > { %v2764_v34 = vcombine.low %v2495_v36, %v2497_v31  ;;  %2779 = vst [vmem:[%s4921_s7] sm:$0x77] %v2763_v60 }
 0x321   : > { %2780 = vst [vmem:[%s4921_s7 + $0x8] sm:$0x77] %v2764_v34 }
 0x32e   : > { %v2535_v63 = vpop.f32.mrb[68].mxu0 }
 0x32f   : > { %v2536_v41 = vadd.f32 %v2535_v63, %v2414_v23  ;;  %v2537_v62 = vpop.f32.mrb[69].mxu0 }
 0x330   : > { %v2576_v7 = vpop.f32.mrb[68].mxu1  ;;  %v2538_v6 = vadd.f32 %v2537_v62, %v2414_v23  ;;  %v2539_v46 = vpop.f32.mrb[70].mxu0 }
 0x331   : > { %v2577_v17 = vadd.f32 %v2576_v7, %v2414_v23  ;;  %v2578_v1 = vpop.f32.mrb[69].mxu1  ;;  %v2540_v3 = vpop.f32.mrb[71].mxu0 }
 0x332   : > { %v2765_v52 = vcombine.low %v2536_v41, %v2538_v6  ;;  %v2579_v18 = vadd.f32 %v2578_v1, %v2414_v23  ;;  %v2580_v26 = vpop.f32.mrb[70].mxu1 }
 0x333   : > { %v2581_v29 = vpop.f32.mrb[71].mxu1 }
 0x334   : > { %2781 = vst [vmem:[%s4921_s7 + $0x10] sm:$0x77] %v2765_v52  ;;  %v2766_v47 = vcombine.low %v2577_v17, %v2579_v18 }
 0x336   : > { %2782 = vst [vmem:[%s4921_s7 + $0x18] sm:$0x77] %v2766_v47 }
 0x343   : > { %v2617_v61 = vpop.f32.mrb[72].mxu0 }
 0x344   : > { %v2618_v50 = vadd.f32 %v2617_v61, %v2414_v23  ;;  %v2619_v39 = vpop.f32.mrb[73].mxu0 }
 0x345   : > { %v2620_v38 = vadd.f32 %v2619_v39, %v2414_v23  ;;  %v2621_v25 = vpop.f32.mrb[74].mxu0 }
 0x346   : > { %v2658_v59 = vpop.f32.mrb[72].mxu1  ;;  %v2622_v8 = vpop.f32.mrb[75].mxu0 }
 0x347   : > { %v2659_v27 = vadd.f32 %v2658_v59, %v2414_v23  ;;  %v2660_v20 = vpop.f32.mrb[73].mxu1  ;;  %v2767_v2 = vcombine.low %v2618_v50, %v2620_v38 }
 0x348   : > { %v2661_v53 = vadd.f32 %v2660_v20, %v2414_v23  ;;  %v2662_v14 = vpop.f32.mrb[74].mxu1 }
 0x349   : > { %v2663_v16 = vpop.f32.mrb[75].mxu1  ;;  %2783 = vst [vmem:[%s4921_s7 + $0x20] sm:$0x77] %v2767_v2 }
 0x34a   : > { %v2768_v21 = vcombine.low %v2659_v27, %v2661_v53 }
 0x34c   : > { %2784 = vst [vmem:[%s4921_s7 + $0x28] sm:$0x77] %v2768_v21 }
 0x353   : > { %v2699_v37 = vpop.f32.mrb[76].mxu0 }
 0x354   : > { %v2700_v30 = vadd.f32 %v2699_v37, %v2414_v23  ;;  %v2701_v12 = vpop.f32.mrb[77].mxu0 }
 0x355   : > { %v2702_v49 = vadd.f32 %v2701_v12, %v2414_v23  ;;  %v2703_v24 = vpop.f32.mrb[78].mxu0 }
 0x356   : > { %v2740_v33 = vpop.f32.mrb[76].mxu1  ;;  %v2704_v57 = vpop.f32.mrb[79].mxu0 }
 0x357   : > { %v2741_v55 = vadd.f32 %v2740_v33, %v2414_v23  ;;  %v2742_v9 = vpop.f32.mrb[77].mxu1  ;;  %v2769_v48 = vcombine.low %v2700_v30, %v2702_v49 }
 0x358   : > { %v2743_v35 = vadd.f32 %v2742_v9, %v2414_v23  ;;  %v2744_v44 = vpop.f32.mrb[78].mxu1 }
 0x359   : > { %v2745_v51 = vpop.f32.mrb[79].mxu1  ;;  %2785 = vst [vmem:[%s4921_s7 + $0x30] sm:$0x77] %v2769_v48 }
 0x35a   : > { %v2770_v0 = vcombine.low %v2741_v55, %v2743_v35 }
 0x35c   : > { %2786 = vst [vmem:[%s4921_s7 + $0x38] sm:$0x77] %v2770_v0 }
 0x35d PF: > { %s20_s20 = sadd.s32 1, %s3211_s20   ;;  %s5134_s15 = smov %s3195_s16 }
 0x35e   : > { %p17_p13 = scmp.ge.s32.totalorder %s20_s20, 4   ;;  %s5135_s16 = smov %s3199_s17 }
 0x35f   : > { %s5136_s17 = smov %s3298_s27  ;;  %s5137_s18 = smov %s3207_s19 }
 0x360   : > { %s5138_s19 = smov %s5140_s22  ;;  %19 = sbr.rel (!%p17_p13) target bundleno = 6 (0x6), region = 89 }
 0x367   :  { %2817 = vsyncpa [#allocation3], 1 }
 0x368   :  { %2819 = vsyncpa [#allocation3 + $0x1], 1 }
 0x369   :  { %2820 = vsyncpa [#allocation5], 1 }
 0x36a   :  { %2822 = vsyncpa [#allocation5 + $0x1], 1 }

</bundles_post_ra>
